<compile_context>
chip_gen: v7x
topology: tpu7x:2x2x1
jax: 0.10.0
libtpu: 0.0.40
codegen_flags: <defaults>
</compile_context>

<pallas_src>
import math
import functools

import numpy as np
import jax
import jax.numpy as jnp
from jax import lax
from jax.experimental import pallas as pl
from jax.experimental.pallas import tpu as pltpu


def _encoder_layer_kernel(num_heads,
                          xf_ref, xq_ref, qmask_ref, kmask_ref,
                          g1_ref, be1_ref,
                          wqT_ref, bqT_ref, wkvT_ref, bkvT_ref,
                          wo_ref, bo_ref,
                          g2_ref, be2_ref, w1_ref, b1_ref, w2_ref, b2_ref,
                          o_ref,
                          kv_sc):
    T = xf_ref.shape[1]
    TQ, D = o_ref.shape[1], o_ref.shape[2]
    H = num_heads
    Dh = D // H
    eps = 1e-6

    g1, be1 = g1_ref[0], be1_ref[0]

    def layer_norm(v, g, b):
        mu = jnp.mean(v, axis=-1, keepdims=True)
        var = jnp.mean(jnp.square(v - mu), axis=-1, keepdims=True)
        return (v - mu) * lax.rsqrt(var + eps) * g + b

    # ---- per-sequence K|V: computed once (first query tile), cached bf16 in VMEM scratch ----
    @pl.when(pl.program_id(1) == 0)
    def _():
        x_full = xf_ref[0].astype(jnp.float32)                       # (T, D)
        xn_full = layer_norm(x_full, g1, be1).astype(jnp.bfloat16)   # (T, D) bf16
        # fused K|V projection straight into transposed (2D, T) layout: contract the D dims
        # of (2D, D) x (T, D) -- NT (rhs-transposed) MXU orientation, no activation transpose.
        kvT = lax.dot_general(wkvT_ref[...], xn_full,
                              (((1,), (1,)), ((), ())),
                              preferred_element_type=jnp.float32)    # (2D, T) f32
        kv_sc[...] = (kvT + bkvT_ref[...]).astype(jnp.bfloat16)      # persist bf16 only

    # ---- query tile (runs every step) ----
    x_q = xq_ref[0].astype(jnp.float32)                              # (TQ, D)
    xn_q = layer_norm(x_q, g1, be1)

    # Q projection in transposed layout (1/sqrt(Dh) already folded into wqT/bqT on host).
    qT = lax.dot_general(wqT_ref[...], xn_q.astype(jnp.bfloat16),
                         (((1,), (1,)), ((), ())),
                         preferred_element_type=jnp.float32) + bqT_ref[...]    # (D, TQ)
    q3 = jnp.transpose(qT.reshape(H, Dh, TQ), (0, 2, 1)).astype(jnp.bfloat16)  # (H, TQ, Dh)

    kv = kv_sc[...]                                                  # (2D, T) bf16
    k3 = kv[:D].reshape(H, Dh, T)                                    # (H, Dh, T)  free re-tiling
    v3 = kv[D:].reshape(H, Dh, T)                                    # (H, Dh, T)

    # ---- additive attention bias rebuilt on the fly (no (B,T,T) HBM tensor) ----
    qm = qmask_ref[0]                                                # (TQ, 1) f32
    km = kmask_ref[0]                                                # (1, T)  f32
    bias = (1.0 - qm * km) * (-1e9)                                  # (TQ, T)

    # ---- all heads in one batched MXU contraction; K/V stay in (H, Dh, T) ----
    s = lax.dot_general(q3, k3, (((2,), (1,)), ((0,), (0,))),
                        preferred_element_type=jnp.float32)          # (H, TQ, T)
    s = s + bias[None, :, :]
    m = jnp.max(s, axis=-1, keepdims=True)
    p = jnp.exp(s - m)
    p = p * pl.reciprocal(jnp.sum(p, axis=-1, keepdims=True), approx=True)

    # context produced directly in (H, Dh, TQ) by contracting the key dims of V and P
    ctx3 = lax.dot_general(v3, p.astype(jnp.bfloat16),
                           (((2,), (2,)), ((0,), (0,))),
                           preferred_element_type=jnp.float32)       # (H, Dh, TQ)
    ctx = ctx3.reshape(D, TQ).T                                      # (TQ, D): one 2-D transpose

    att = jnp.dot(ctx.astype(jnp.bfloat16), wo_ref[...],
                  preferred_element_type=jnp.float32) + bo_ref[0]    # (TQ, D)

    # dropout is identity at inference; residual with original x
    h = att + x_q

    # ---- position-wise feed forward (LN -> Linear -> ReLU -> Linear -> +res) ----
    hn = layer_norm(h, g2_ref[0], be2_ref[0])
    ff = jnp.dot(hn.astype(jnp.bfloat16), w1_ref[...],
                 preferred_element_type=jnp.float32) + b1_ref[0]
    ff = jnp.maximum(ff, 0.0)
    ff = jnp.dot(ff.astype(jnp.bfloat16), w2_ref[...],
                 preferred_element_type=jnp.float32) + b2_ref[0]

    o_ref[0] = (ff + h).astype(o_ref.dtype)


def transformer_encoder_layer(x, mask, params, num_heads, q_tile=None):
    B, T, D = x.shape
    FF = params["w1"].shape[1]
    Dh = D // num_heads
    if q_tile is None:
        q_tile = T
        for cand in (256, 128):        # 256 fills the v6e/v7x 256x256 MXU; 128 matches v5e
            if T > cand and T % cand == 0:
                q_tile = cand
                break
    assert T % q_tile == 0, "q_tile must divide T"
    assert q_tile == T or q_tile % 8 == 0, "q_tile must be a multiple of 8"
    assert D % num_heads == 0 and Dh % 8 == 0, "Dh must be a multiple of 8"
    n_q = T // q_tile

    f32, bf16 = jnp.float32, jnp.bfloat16
    scale = 1.0 / math.sqrt(Dh)

    # (B,T) mask shipped in two thin layouts; the (T,T) outer product is rebuilt in-kernel.
    mask_rows = mask.astype(f32).reshape(B, T, 1)
    mask_cols = mask.astype(f32).reshape(B, 1, T)

    # bf16 weights.  Q weight/bias transposed with 1/sqrt(Dh) folded in; K and V fused into
    # one (2D, D) transposed weight so the full-sequence projection is a single MXU matmul.
    wqT = (params["wq"].T * scale).astype(bf16)
    bqT = (params["bq"].reshape(D, 1) * scale).astype(f32)
    wkvT = jnp.concatenate([params["wk"].T, params["wv"].T], axis=0).astype(bf16)   # (2D, D)
    bkvT = jnp.concatenate([params["bk"].reshape(D, 1),
                            params["bv"].reshape(D, 1)], axis=0).astype(f32)        # (2D, 1)
    wo = params["wo"].astype(bf16)
    w1 = params["w1"].astype(bf16)
    w2 = params["w2"].astype(bf16)

    def _const(shape):
        # Constant-index blocks (weights / biases / LN params): single-buffered, since their
        # index_map never changes -- halves their VMEM footprint (critical on v7x's 64 MiB).
        return pl.BlockSpec(shape, lambda b, qi: (0, 0), pipeline_mode=pl.Buffered(1))

    in_specs = [
        pl.BlockSpec((1, T, D), lambda b, qi: (b, 0, 0)),          # x full seq (K/V path)
        pl.BlockSpec((1, q_tile, D), lambda b, qi: (b, qi, 0)),    # x query tile
        pl.BlockSpec((1, q_tile, 1), lambda b, qi: (b, qi, 0)),    # query-row mask tile
        pl.BlockSpec((1, 1, T), lambda b, qi: (b, 0, 0)),          # key mask (full)
        _const((1, D)), _const((1, D)),                            # LN1 gamma/beta
        _const((D, D)), _const((D, 1)),                            # WqT, bqT (pre-scaled)
        _const((2 * D, D)), _const((2 * D, 1)),                    # fused WkvT, bkvT
        _const((D, D)), _const((1, D)),                            # Wo, bo
        _const((1, D)), _const((1, D)),                            # LN2 gamma/beta
        _const((D, FF)), _const((1, FF)),                          # FFN W1, b1
        _const((FF, D)), _const((1, D)),                           # FFN W2, b2
    ]

    # ---- VMEM budget derived from the device (64 MiB/TC on v7x, 128 MiB on v5e/v6e) ----
    try:
        device_vmem = int(pltpu.get_tpu_info().vmem_capacity_bytes)
    except Exception:
        device_vmem = 64 * 2 ** 20
    weight_b = 2 * (4 * D * D + 2 * D * FF)                         # bf16 weights, single-buffered
    bias_b = 4 * (3 * D * 128 + 8 * D + 2 * FF)                     # (.,1) blocks pad to 128 lanes
    scratch_b = 2 * (2 * D * T)                                     # cached bf16 K|V scratch
    stream_b = 2 * 4 * (T * D + q_tile * D + 128 * q_tile + T)      # double-buffered x / mask tiles
    act_b = (4 * (4 * T * D + 10 * q_tile * D
                  + 3 * num_heads * q_tile * T + 3 * q_tile * FF)
             + 2 * (2 * D * T + num_heads * q_tile * (T + 2 * Dh) + q_tile * (D + FF)))
    need = int(1.5 * (weight_b + bias_b + scratch_b + stream_b + act_b))
    vmem_limit = int(min(int(0.9 * device_vmem), max(16 * 2 ** 20, need)))

    kernel = functools.partial(_encoder_layer_kernel, num_heads)
    return pl.pallas_call(
        kernel,
        out_shape=jax.ShapeDtypeStruct((B, T, D), x.dtype),
        grid_spec=pltpu.PrefetchScalarGridSpec(
            num_scalar_prefetch=0,
            grid=(B, n_q),
            in_specs=in_specs,
            out_specs=pl.BlockSpec((1, q_tile, D), lambda b, qi: (b, qi, 0)),
            scratch_shapes=[pltpu.VMEM((2 * D, T), jnp.bfloat16)],   # per-sequence K|V cache
        ),
        compiler_params=pltpu.CompilerParams(
            # batch axis feeds both megacore TCs; qi must be sequential for the K/V cache.
            dimension_semantics=("parallel", "arbitrary"),
            vmem_limit_bytes=vmem_limit),
    )(x, x, mask_rows, mask_cols,
      params["ln1_g"], params["ln1_b"],
      wqT, bqT, wkvT, bkvT,
      wo, params["bo"],
      params["ln2_g"], params["ln2_b"],
      w1, params["b1"], w2, params["b2"])


def reference_layer(x, mask, params, num_heads):
    """Plain-JAX (f32) reference of the same forward pass for a correctness check."""
    B, T, D = x.shape
    Dh = D // num_heads
    eps = 1e-6

    def ln(v, g, b):
        mu = jnp.mean(v, -1, keepdims=True)
        var = jnp.mean((v - mu) ** 2, -1, keepdims=True)
        return (v - mu) / jnp.sqrt(var + eps) * g + b

    xn = ln(x, params["ln1_g"][0], params["ln1_b"][0])
    q = xn @ params["wq"] + params["bq"][0]
    k = xn @ params["wk"] + params["bk"][0]
    v = xn @ params["wv"] + params["bv"][0]
    q = q.reshape(B, T, num_heads, Dh).transpose(0, 2, 1, 3)
    k = k.reshape(B, T, num_heads, Dh).transpose(0, 2, 1, 3)
    v = v.reshape(B, T, num_heads, Dh).transpose(0, 2, 1, 3)
    m2 = mask[:, None, :] * mask[:, :, None]
    bias = (1.0 - m2.astype(jnp.float32)) * (-1e9)
    s = jnp.einsum("bhtd,bhsd->bhts", q, k) / math.sqrt(Dh) + bias[:, None]
    attn = jax.nn.softmax(s, axis=-1)
    ctx = jnp.einsum("bhts,bhsd->bhtd", attn, v).transpose(0, 2, 1, 3).reshape(B, T, D)
    h = ctx @ params["wo"] + params["bo"][0] + x
    hn = ln(h, params["ln2_g"][0], params["ln2_b"][0])
    ff = jnp.maximum(hn @ params["w1"] + params["b1"][0], 0.0) @ params["w2"] + params["b2"][0]
    return ff + h


if __name__ == "__main__":
    B, T, D, H, FF = 2, 16, 32, 4, 64
    TQ = 8                                  # two query tiles per sequence -> grid (2, 2)

    key = jax.random.PRNGKey(0)
    ks = jax.random.split(key, 16)
    sd = 0.02

    params = {
        "ln1_g": jnp.ones((1, D), jnp.float32),
        "ln1_b": jnp.zeros((1, D), jnp.float32),
        "wq": sd * jax.random.normal(ks[0], (D, D), jnp.float32),
        "bq": sd * jax.random.normal(ks[1], (1, D), jnp.float32),
        "wk": sd * jax.random.normal(ks[2], (D, D), jnp.float32),
        "bk": sd * jax.random.normal(ks[3], (1, D), jnp.float32),
        "wv": sd * jax.random.normal(ks[4], (D, D), jnp.float32),
        "bv": sd * jax.random.normal(ks[5], (1, D), jnp.float32),
        "wo": sd * jax.random.normal(ks[6], (D, D), jnp.float32),
        "bo": sd * jax.random.normal(ks[7], (1, D), jnp.float32),
        "ln2_g": jnp.ones((1, D), jnp.float32),
        "ln2_b": jnp.zeros((1, D), jnp.float32),
        "w1": sd * jax.random.normal(ks[8], (D, FF), jnp.float32),
        "b1": sd * jax.random.normal(ks[9], (1, FF), jnp.float32),
        "w2": sd * jax.random.normal(ks[10], (FF, D), jnp.float32),
        "b2": sd * jax.random.normal(ks[11], (1, D), jnp.float32),
    }

    x = jax.random.normal(ks[12], (B, T, D), jnp.float32)
    # padding mask: sequence 0 is full length, sequence 1 has length 10
    lengths = jnp.array([T, 10], jnp.int32)
    mask = (jnp.arange(T)[None, :] < lengths[:, None]).astype(jnp.float32)   # (B, T)

    out = transformer_encoder_layer(x, mask, params, num_heads=H, q_tile=TQ)
    out = jax.block_until_ready(out)

    ref = reference_layer(x, mask, params, num_heads=H)
    np.testing.assert_allclose(np.asarray(out), np.asarray(ref), atol=2e-2, rtol=2e-2)

    print("KERNEL_OK")
</pallas_src>

<mosaic_0001>
module attributes {stable_mosaic.version = 11 : i64} {
  func.func @_encoder_layer_kernel(%arg0: i32, %arg1: i32, %arg2: memref<1x16x32xf32, #tpu.memory_space<vmem>>, %arg3: memref<1x8x32xf32, #tpu.memory_space<vmem>>, %arg4: memref<1x8x1xf32, #tpu.memory_space<vmem>>, %arg5: memref<1x1x16xf32, #tpu.memory_space<vmem>>, %arg6: memref<1x32xf32, #tpu.memory_space<vmem>>, %arg7: memref<1x32xf32, #tpu.memory_space<vmem>>, %arg8: memref<32x32xbf16, #tpu.memory_space<vmem>>, %arg9: memref<32x1xf32, #tpu.memory_space<vmem>>, %arg10: memref<64x32xbf16, #tpu.memory_space<vmem>>, %arg11: memref<64x1xf32, #tpu.memory_space<vmem>>, %arg12: memref<32x32xbf16, #tpu.memory_space<vmem>>, %arg13: memref<1x32xf32, #tpu.memory_space<vmem>>, %arg14: memref<1x32xf32, #tpu.memory_space<vmem>>, %arg15: memref<1x32xf32, #tpu.memory_space<vmem>>, %arg16: memref<32x64xbf16, #tpu.memory_space<vmem>>, %arg17: memref<1x64xf32, #tpu.memory_space<vmem>>, %arg18: memref<64x32xbf16, #tpu.memory_space<vmem>>, %arg19: memref<1x32xf32, #tpu.memory_space<vmem>>, %arg20: memref<1x8x32xf32, #tpu.memory_space<vmem>>, %arg21: memref<64x16xbf16, #tpu.memory_space<vmem>>) attributes {dimension_semantics = [#tpu.dimension_semantics<parallel>, #tpu.dimension_semantics<arbitrary>], iteration_bounds = array<i64: 2, 2>, scalar_prefetch = 0 : i64, scratch_operands = 1 : i64, tpu.core_type = #tpu.core_type<tc>, window_params = [{transform_indices = @transform_0, window_bounds = array<i64: 1, 16, 32>}, {transform_indices = @transform_1, window_bounds = array<i64: 1, 8, 32>}, {transform_indices = @transform_2, window_bounds = array<i64: 1, 8, 1>}, {transform_indices = @transform_3, window_bounds = array<i64: 1, 1, 16>}, {pipeline_mode = #tpu.pipeline_mode<synchronous>, transform_indices = @transform_4, window_bounds = array<i64: 1, 32>}, {pipeline_mode = #tpu.pipeline_mode<synchronous>, transform_indices = @transform_5, window_bounds = array<i64: 1, 32>}, {pipeline_mode = #tpu.pipeline_mode<synchronous>, transform_indices = @transform_6, window_bounds = array<i64: 32, 32>}, {pipeline_mode = #tpu.pipeline_mode<synchronous>, transform_indices = @transform_7, window_bounds = array<i64: 32, 1>}, {pipeline_mode = #tpu.pipeline_mode<synchronous>, transform_indices = @transform_8, window_bounds = array<i64: 64, 32>}, {pipeline_mode = #tpu.pipeline_mode<synchronous>, transform_indices = @transform_9, window_bounds = array<i64: 64, 1>}, {pipeline_mode = #tpu.pipeline_mode<synchronous>, transform_indices = @transform_10, window_bounds = array<i64: 32, 32>}, {pipeline_mode = #tpu.pipeline_mode<synchronous>, transform_indices = @transform_11, window_bounds = array<i64: 1, 32>}, {pipeline_mode = #tpu.pipeline_mode<synchronous>, transform_indices = @transform_12, window_bounds = array<i64: 1, 32>}, {pipeline_mode = #tpu.pipeline_mode<synchronous>, transform_indices = @transform_13, window_bounds = array<i64: 1, 32>}, {pipeline_mode = #tpu.pipeline_mode<synchronous>, transform_indices = @transform_14, window_bounds = array<i64: 32, 64>}, {pipeline_mode = #tpu.pipeline_mode<synchronous>, transform_indices = @transform_15, window_bounds = array<i64: 1, 64>}, {pipeline_mode = #tpu.pipeline_mode<synchronous>, transform_indices = @transform_16, window_bounds = array<i64: 64, 32>}, {pipeline_mode = #tpu.pipeline_mode<synchronous>, transform_indices = @transform_17, window_bounds = array<i64: 1, 32>}, {transform_indices = @transform_18, window_bounds = array<i64: 1, 8, 32>}]} {
    %c0 = arith.constant 0 : index
    %c0_0 = arith.constant 0 : index
    %0 = vector.load %arg6[%c0, %c0_0] : memref<1x32xf32, #tpu.memory_space<vmem>>, vector<1x32xf32>
    %1 = vector.shape_cast %0 : vector<1x32xf32> to vector<32xf32>
    %c0_1 = arith.constant 0 : index
    %c0_2 = arith.constant 0 : index
    %2 = vector.load %arg7[%c0_1, %c0_2] : memref<1x32xf32, #tpu.memory_space<vmem>>, vector<1x32xf32>
    %3 = vector.shape_cast %2 : vector<1x32xf32> to vector<32xf32>
    %c0_i32 = arith.constant 0 : i32
    %4 = arith.cmpi eq, %arg1, %c0_i32 : i32
    %5 = arith.extui %4 : i1 to i32
    %c0_i32_3 = arith.constant 0 : i32
    %6 = arith.cmpi ne, %5, %c0_i32_3 : i32
    scf.if %6 {
      %c0_58 = arith.constant 0 : index
      %c0_59 = arith.constant 0 : index
      %c0_60 = arith.constant 0 : index
      %135 = vector.load %arg2[%c0_58, %c0_59, %c0_60] : memref<1x16x32xf32, #tpu.memory_space<vmem>>, vector<1x16x32xf32>
      %136 = vector.shape_cast %135 : vector<1x16x32xf32> to vector<16x32xf32>
      %cst_61 = arith.constant dense<0.000000e+00> : vector<16xf32>
      %137 = vector.multi_reduction <add>, %136, %cst_61 [1] : vector<16x32xf32> to vector<16xf32>
      %138 = vector.shape_cast %137 : vector<16xf32> to vector<16x1xf32>
      %cst_62 = arith.constant 3.200000e+01 : f32
      %139 = vector.broadcast %cst_62 : f32 to vector<16x1xf32>
      %140 = arith.divf %138, %139 : vector<16x1xf32>
      %141 = vector.broadcast %140 : vector<16x1xf32> to vector<16x32xf32>
      %142 = arith.subf %136, %141 : vector<16x32xf32>
      %143 = arith.mulf %142, %142 : vector<16x32xf32>
      %cst_63 = arith.constant dense<0.000000e+00> : vector<16xf32>
      %144 = vector.multi_reduction <add>, %143, %cst_63 [1] : vector<16x32xf32> to vector<16xf32>
      %145 = vector.shape_cast %144 : vector<16xf32> to vector<16x1xf32>
      %cst_64 = arith.constant 3.200000e+01 : f32
      %146 = vector.broadcast %cst_64 : f32 to vector<16x1xf32>
      %147 = arith.divf %145, %146 : vector<16x1xf32>
      %148 = vector.broadcast %140 : vector<16x1xf32> to vector<16x32xf32>
      %149 = arith.subf %136, %148 : vector<16x32xf32>
      %cst_65 = arith.constant 9.99999997E-7 : f32
      %150 = vector.broadcast %cst_65 : f32 to vector<16x1xf32>
      %151 = arith.addf %147, %150 : vector<16x1xf32>
      %152 = math.rsqrt %151 : vector<16x1xf32>
      %153 = vector.broadcast %152 : vector<16x1xf32> to vector<16x32xf32>
      %154 = arith.mulf %149, %153 : vector<16x32xf32>
      %155 = vector.shape_cast %1 : vector<32xf32> to vector<1x32xf32>
      %156 = vector.broadcast %155 : vector<1x32xf32> to vector<16x32xf32>
      %157 = arith.mulf %154, %156 : vector<16x32xf32>
      %158 = vector.shape_cast %3 : vector<32xf32> to vector<1x32xf32>
      %159 = vector.broadcast %158 : vector<1x32xf32> to vector<16x32xf32>
      %160 = arith.addf %157, %159 : vector<16x32xf32>
      %161 = arith.truncf %160 : vector<16x32xf32> to vector<16x32xbf16>
      %c0_66 = arith.constant 0 : index
      %c0_67 = arith.constant 0 : index
      %162 = vector.load %arg10[%c0_66, %c0_67] : memref<64x32xbf16, #tpu.memory_space<vmem>>, vector<64x32xbf16>
      %cst_68 = arith.constant dense<0.000000e+00> : vector<64x16xf32>
      %163 = tpu.matmul %162, %161, %cst_68 {dimension_numbers = #tpu.dot_dimension_numbers<[1], [1], [0], [0], [0, 0, 1, 0], [], []>} : vector<64x32xbf16>, vector<16x32xbf16>, vector<64x16xf32> -> vector<64x16xf32>
      %c0_69 = arith.constant 0 : index
      %c0_70 = arith.constant 0 : index
      %164 = vector.load %arg11[%c0_69, %c0_70] : memref<64x1xf32, #tpu.memory_space<vmem>>, vector<64x1xf32>
      %165 = vector.broadcast %164 : vector<64x1xf32> to vector<64x16xf32>
      %166 = arith.addf %163, %165 : vector<64x16xf32>
      %167 = arith.truncf %166 : vector<64x16xf32> to vector<64x16xbf16>
      %c0_71 = arith.constant 0 : index
      %c0_72 = arith.constant 0 : index
      %168 = vector.load %arg21[%c0_71, %c0_72] : memref<64x16xbf16, #tpu.memory_space<vmem>>, vector<64x16xbf16>
      tpu.vector_store %arg21[%c0_71, %c0_72], %167 {strides = array<i32>} : memref<64x16xbf16, #tpu.memory_space<vmem>>, vector<64x16xbf16>,
    } else {
    }
    %c0_4 = arith.constant 0 : index
    %c0_5 = arith.constant 0 : index
    %c0_6 = arith.constant 0 : index
    %7 = vector.load %arg3[%c0_4, %c0_5, %c0_6] : memref<1x8x32xf32, #tpu.memory_space<vmem>>, vector<1x8x32xf32>
    %8 = vector.shape_cast %7 : vector<1x8x32xf32> to vector<8x32xf32>
    %cst = arith.constant dense<0.000000e+00> : vector<8xf32>
    %9 = vector.multi_reduction <add>, %8, %cst [1] : vector<8x32xf32> to vector<8xf32>
    %10 = vector.shape_cast %9 : vector<8xf32> to vector<8x1xf32>
    %cst_7 = arith.constant 3.200000e+01 : f32
    %11 = vector.broadcast %cst_7 : f32 to vector<8x1xf32>
    %12 = arith.divf %10, %11 : vector<8x1xf32>
    %13 = vector.broadcast %12 : vector<8x1xf32> to vector<8x32xf32>
    %14 = arith.subf %8, %13 : vector<8x32xf32>
    %15 = arith.mulf %14, %14 : vector<8x32xf32>
    %cst_8 = arith.constant dense<0.000000e+00> : vector<8xf32>
    %16 = vector.multi_reduction <add>, %15, %cst_8 [1] : vector<8x32xf32> to vector<8xf32>
    %17 = vector.shape_cast %16 : vector<8xf32> to vector<8x1xf32>
    %cst_9 = arith.constant 3.200000e+01 : f32
    %18 = vector.broadcast %cst_9 : f32 to vector<8x1xf32>
    %19 = arith.divf %17, %18 : vector<8x1xf32>
    %20 = vector.broadcast %12 : vector<8x1xf32> to vector<8x32xf32>
    %21 = arith.subf %8, %20 : vector<8x32xf32>
    %cst_10 = arith.constant 9.99999997E-7 : f32
    %22 = vector.broadcast %cst_10 : f32 to vector<8x1xf32>
    %23 = arith.addf %19, %22 : vector<8x1xf32>
    %24 = math.rsqrt %23 : vector<8x1xf32>
    %25 = vector.broadcast %24 : vector<8x1xf32> to vector<8x32xf32>
    %26 = arith.mulf %21, %25 : vector<8x32xf32>
    %27 = vector.shape_cast %1 : vector<32xf32> to vector<1x32xf32>
    %28 = vector.broadcast %27 : vector<1x32xf32> to vector<8x32xf32>
    %29 = arith.mulf %26, %28 : vector<8x32xf32>
    %30 = vector.shape_cast %3 : vector<32xf32> to vector<1x32xf32>
    %31 = vector.broadcast %30 : vector<1x32xf32> to vector<8x32xf32>
    %32 = arith.addf %29, %31 : vector<8x32xf32>
    %c0_11 = arith.constant 0 : index
    %c0_12 = arith.constant 0 : index
    %33 = vector.load %arg8[%c0_11, %c0_12] : memref<32x32xbf16, #tpu.memory_space<vmem>>, vector<32x32xbf16>
    %34 = arith.truncf %32 : vector<8x32xf32> to vector<8x32xbf16>
    %cst_13 = arith.constant dense<0.000000e+00> : vector<32x8xf32>
    %35 = tpu.matmul %33, %34, %cst_13 {dimension_numbers = #tpu.dot_dimension_numbers<[1], [1], [0], [0], [0, 0, 1, 0], [], []>} : vector<32x32xbf16>, vector<8x32xbf16>, vector<32x8xf32> -> vector<32x8xf32>
    %c0_14 = arith.constant 0 : index
    %c0_15 = arith.constant 0 : index
    %36 = vector.load %arg9[%c0_14, %c0_15] : memref<32x1xf32, #tpu.memory_space<vmem>>, vector<32x1xf32>
    %37 = vector.broadcast %36 : vector<32x1xf32> to vector<32x8xf32>
    %38 = arith.addf %35, %37 : vector<32x8xf32>
    %39 = vector.shape_cast %38 : vector<32x8xf32> to vector<4x8x8xf32>
    %40 = tpu.transpose %39, [0, 2, 1] : vector<4x8x8xf32> -> vector<4x8x8xf32>
    %41 = arith.truncf %40 : vector<4x8x8xf32> to vector<4x8x8xbf16>
    %c0_16 = arith.constant 0 : index
    %c0_17 = arith.constant 0 : index
    %42 = vector.load %arg21[%c0_16, %c0_17] : memref<64x16xbf16, #tpu.memory_space<vmem>>, vector<64x16xbf16>
    %43 = vector.extract_strided_slice %42 {offsets = [0, 0], sizes = [32, 16], strides = [1, 1]} : vector<64x16xbf16> to vector<32x16xbf16>
    %44 = vector.shape_cast %43 : vector<32x16xbf16> to vector<4x8x16xbf16>
    %45 = vector.extract_strided_slice %42 {offsets = [32, 0], sizes = [32, 16], strides = [1, 1]} : vector<64x16xbf16> to vector<32x16xbf16>
    %46 = vector.shape_cast %45 : vector<32x16xbf16> to vector<4x8x16xbf16>
    %c0_18 = arith.constant 0 : index
    %c0_19 = arith.constant 0 : index
    %c0_20 = arith.constant 0 : index
    %47 = vector.load %arg4[%c0_18, %c0_19, %c0_20] : memref<1x8x1xf32, #tpu.memory_space<vmem>>, vector<1x8x1xf32>
    %48 = vector.shape_cast %47 : vector<1x8x1xf32> to vector<8x1xf32>
    %c0_21 = arith.constant 0 : index
    %c0_22 = arith.constant 0 : index
    %c0_23 = arith.constant 0 : index
    %49 = vector.load %arg5[%c0_21, %c0_22, %c0_23] : memref<1x1x16xf32, #tpu.memory_space<vmem>>, vector<1x1x16xf32>
    %50 = vector.shape_cast %49 : vector<1x1x16xf32> to vector<1x16xf32>
    %51 = vector.broadcast %48 : vector<8x1xf32> to vector<8x16xf32>
    %52 = vector.broadcast %50 : vector<1x16xf32> to vector<8x16xf32>
    %53 = arith.mulf %51, %52 : vector<8x16xf32>
    %cst_24 = arith.constant 1.000000e+00 : f32
    %54 = vector.broadcast %cst_24 : f32 to vector<8x16xf32>
    %55 = arith.subf %54, %53 : vector<8x16xf32>
    %cst_25 = arith.constant -1.000000e+09 : f32
    %56 = vector.broadcast %cst_25 : f32 to vector<8x16xf32>
    %57 = arith.mulf %55, %56 : vector<8x16xf32>
    %cst_26 = arith.constant dense<0.000000e+00> : vector<4x8x16xf32>
    %58 = tpu.matmul %41, %44, %cst_26 {dimension_numbers = #tpu.dot_dimension_numbers<[2], [1], [1], [2], [0, 0, 0, 1, 1, 2], [0], [0]>} : vector<4x8x8xbf16>, vector<4x8x16xbf16>, vector<4x8x16xf32> -> vector<4x8x16xf32>
    %59 = vector.shape_cast %57 : vector<8x16xf32> to vector<1x8x16xf32>
    %60 = vector.broadcast %59 : vector<1x8x16xf32> to vector<4x8x16xf32>
    %61 = arith.addf %58, %60 : vector<4x8x16xf32>
    %cst_27 = arith.constant dense<0xFF800000> : vector<4x8xf32>
    %62 = vector.multi_reduction <maximumf>, %61, %cst_27 [2] : vector<4x8x16xf32> to vector<4x8xf32>
    %63 = vector.shape_cast %62 : vector<4x8xf32> to vector<4x8x1xf32>
    %64 = vector.broadcast %63 : vector<4x8x1xf32> to vector<4x8x16xf32>
    %65 = arith.subf %61, %64 : vector<4x8x16xf32>
    %66 = math.exp %65 : vector<4x8x16xf32>
    %cst_28 = arith.constant dense<0.000000e+00> : vector<4x8xf32>
    %67 = vector.multi_reduction <add>, %66, %cst_28 [2] : vector<4x8x16xf32> to vector<4x8xf32>
    %68 = vector.shape_cast %67 : vector<4x8xf32> to vector<4x8x1xf32>
    %69 = tpu.reciprocal %68 {approx = true} : vector<4x8x1xf32> -> vector<4x8x1xf32>
    %70 = vector.broadcast %69 : vector<4x8x1xf32> to vector<4x8x16xf32>
    %71 = arith.mulf %66, %70 : vector<4x8x16xf32>
    %72 = arith.truncf %71 : vector<4x8x16xf32> to vector<4x8x16xbf16>
    %cst_29 = arith.constant dense<0.000000e+00> : vector<4x8x8xf32>
    %73 = tpu.matmul %46, %72, %cst_29 {dimension_numbers = #tpu.dot_dimension_numbers<[2], [2], [1], [1], [0, 0, 0, 1, 1, 1], [0], [0]>} : vector<4x8x16xbf16>, vector<4x8x16xbf16>, vector<4x8x8xf32> -> vector<4x8x8xf32>
    %74 = vector.shape_cast %73 : vector<4x8x8xf32> to vector<32x8xf32>
    %75 = tpu.transpose %74, [1, 0] : vector<32x8xf32> -> vector<8x32xf32>
    %76 = arith.truncf %75 : vector<8x32xf32> to vector<8x32xbf16>
    %c0_30 = arith.constant 0 : index
    %c0_31 = arith.constant 0 : index
    %77 = vector.load %arg12[%c0_30, %c0_31] : memref<32x32xbf16, #tpu.memory_space<vmem>>, vector<32x32xbf16>
    %cst_32 = arith.constant dense<0.000000e+00> : vector<8x32xf32>
    %78 = tpu.matmul %76, %77, %cst_32 {dimension_numbers = #tpu.dot_dimension_numbers<[1], [0], [0], [1], [0, 0, 1, 1], [], []>} : vector<8x32xbf16>, vector<32x32xbf16>, vector<8x32xf32> -> vector<8x32xf32>
    %c0_33 = arith.constant 0 : index
    %c0_34 = arith.constant 0 : index
    %79 = vector.load %arg13[%c0_33, %c0_34] : memref<1x32xf32, #tpu.memory_space<vmem>>, vector<1x32xf32>
    %80 = vector.shape_cast %79 : vector<1x32xf32> to vector<32xf32>
    %81 = vector.shape_cast %80 : vector<32xf32> to vector<1x32xf32>
    %82 = vector.broadcast %81 : vector<1x32xf32> to vector<8x32xf32>
    %83 = arith.addf %78, %82 : vector<8x32xf32>
    %84 = arith.addf %83, %8 : vector<8x32xf32>
    %c0_35 = arith.constant 0 : index
    %c0_36 = arith.constant 0 : index
    %85 = vector.load %arg14[%c0_35, %c0_36] : memref<1x32xf32, #tpu.memory_space<vmem>>, vector<1x32xf32>
    %86 = vector.shape_cast %85 : vector<1x32xf32> to vector<32xf32>
    %c0_37 = arith.constant 0 : index
    %c0_38 = arith.constant 0 : index
    %87 = vector.load %arg15[%c0_37, %c0_38] : memref<1x32xf32, #tpu.memory_space<vmem>>, vector<1x32xf32>
    %88 = vector.shape_cast %87 : vector<1x32xf32> to vector<32xf32>
    %cst_39 = arith.constant dense<0.000000e+00> : vector<8xf32>
    %89 = vector.multi_reduction <add>, %84, %cst_39 [1] : vector<8x32xf32> to vector<8xf32>
    %90 = vector.shape_cast %89 : vector<8xf32> to vector<8x1xf32>
    %cst_40 = arith.constant 3.200000e+01 : f32
    %91 = vector.broadcast %cst_40 : f32 to vector<8x1xf32>
    %92 = arith.divf %90, %91 : vector<8x1xf32>
    %93 = vector.broadcast %92 : vector<8x1xf32> to vector<8x32xf32>
    %94 = arith.subf %84, %93 : vector<8x32xf32>
    %95 = arith.mulf %94, %94 : vector<8x32xf32>
    %cst_41 = arith.constant dense<0.000000e+00> : vector<8xf32>
    %96 = vector.multi_reduction <add>, %95, %cst_41 [1] : vector<8x32xf32> to vector<8xf32>
    %97 = vector.shape_cast %96 : vector<8xf32> to vector<8x1xf32>
    %cst_42 = arith.constant 3.200000e+01 : f32
    %98 = vector.broadcast %cst_42 : f32 to vector<8x1xf32>
    %99 = arith.divf %97, %98 : vector<8x1xf32>
    %100 = vector.broadcast %92 : vector<8x1xf32> to vector<8x32xf32>
    %101 = arith.subf %84, %100 : vector<8x32xf32>
    %cst_43 = arith.constant 9.99999997E-7 : f32
    %102 = vector.broadcast %cst_43 : f32 to vector<8x1xf32>
    %103 = arith.addf %99, %102 : vector<8x1xf32>
    %104 = math.rsqrt %103 : vector<8x1xf32>
    %105 = vector.broadcast %104 : vector<8x1xf32> to vector<8x32xf32>
    %106 = arith.mulf %101, %105 : vector<8x32xf32>
    %107 = vector.shape_cast %86 : vector<32xf32> to vector<1x32xf32>
    %108 = vector.broadcast %107 : vector<1x32xf32> to vector<8x32xf32>
    %109 = arith.mulf %106, %108 : vector<8x32xf32>
    %110 = vector.shape_cast %88 : vector<32xf32> to vector<1x32xf32>
    %111 = vector.broadcast %110 : vector<1x32xf32> to vector<8x32xf32>
    %112 = arith.addf %109, %111 : vector<8x32xf32>
    %113 = arith.truncf %112 : vector<8x32xf32> to vector<8x32xbf16>
    %c0_44 = arith.constant 0 : index
    %c0_45 = arith.constant 0 : index
    %114 = vector.load %arg16[%c0_44, %c0_45] : memref<32x64xbf16, #tpu.memory_space<vmem>>, vector<32x64xbf16>
    %cst_46 = arith.constant dense<0.000000e+00> : vector<8x64xf32>
    %115 = tpu.matmul %113, %114, %cst_46 {dimension_numbers = #tpu.dot_dimension_numbers<[1], [0], [0], [1], [0, 0, 1, 1], [], []>} : vector<8x32xbf16>, vector<32x64xbf16>, vector<8x64xf32> -> vector<8x64xf32>
    %c0_47 = arith.constant 0 : index
    %c0_48 = arith.constant 0 : index
    %116 = vector.load %arg17[%c0_47, %c0_48] : memref<1x64xf32, #tpu.memory_space<vmem>>, vector<1x64xf32>
    %117 = vector.shape_cast %116 : vector<1x64xf32> to vector<64xf32>
    %118 = vector.shape_cast %117 : vector<64xf32> to vector<1x64xf32>
    %119 = vector.broadcast %118 : vector<1x64xf32> to vector<8x64xf32>
    %120 = arith.addf %115, %119 : vector<8x64xf32>
    %cst_49 = arith.constant 0.000000e+00 : f32
    %121 = vector.broadcast %cst_49 : f32 to vector<8x64xf32>
    %122 = arith.maximumf %120, %121 : vector<8x64xf32>
    %123 = arith.truncf %122 : vector<8x64xf32> to vector<8x64xbf16>
    %c0_50 = arith.constant 0 : index
    %c0_51 = arith.constant 0 : index
    %124 = vector.load %arg18[%c0_50, %c0_51] : memref<64x32xbf16, #tpu.memory_space<vmem>>, vector<64x32xbf16>
    %cst_52 = arith.constant dense<0.000000e+00> : vector<8x32xf32>
    %125 = tpu.matmul %123, %124, %cst_52 {dimension_numbers = #tpu.dot_dimension_numbers<[1], [0], [0], [1], [0, 0, 1, 1], [], []>} : vector<8x64xbf16>, vector<64x32xbf16>, vector<8x32xf32> -> vector<8x32xf32>
    %c0_53 = arith.constant 0 : index
    %c0_54 = arith.constant 0 : index
    %126 = vector.load %arg19[%c0_53, %c0_54] : memref<1x32xf32, #tpu.memory_space<vmem>>, vector<1x32xf32>
    %127 = vector.shape_cast %126 : vector<1x32xf32> to vector<32xf32>
    %128 = vector.shape_cast %127 : vector<32xf32> to vector<1x32xf32>
    %129 = vector.broadcast %128 : vector<1x32xf32> to vector<8x32xf32>
    %130 = arith.addf %125, %129 : vector<8x32xf32>
    %131 = arith.addf %130, %84 : vector<8x32xf32>
    %c0_55 = arith.constant 0 : index
    %c0_56 = arith.constant 0 : index
    %c0_57 = arith.constant 0 : index
    %132 = vector.load %arg20[%c0_55, %c0_56, %c0_57] : memref<1x8x32xf32, #tpu.memory_space<vmem>>, vector<1x8x32xf32>
    %133 = vector.shape_cast %132 : vector<1x8x32xf32> to vector<8x32xf32>
    %134 = vector.shape_cast %131 : vector<8x32xf32> to vector<1x8x32xf32>
    tpu.vector_store %arg20[%c0_55, %c0_56, %c0_57], %134 {strides = array<i32>} : memref<1x8x32xf32, #tpu.memory_space<vmem>>, vector<1x8x32xf32>,
    return
  }
  func.func @transform_0(%arg0: i32, %arg1: i32) -> (i32, i32, i32) {
    %c0_i32 = arith.constant 0 : i32
    %c0_i32_0 = arith.constant 0 : i32
    %c0_i32_1 = arith.constant 0 : i32
    return %arg0, %c0_i32, %c0_i32_0 : i32, i32, i32
  }
  func.func @transform_1(%arg0: i32, %arg1: i32) -> (i32, i32, i32) {
    %c0_i32 = arith.constant 0 : i32
    %c0_i32_0 = arith.constant 0 : i32
    return %arg0, %arg1, %c0_i32 : i32, i32, i32
  }
  func.func @transform_2(%arg0: i32, %arg1: i32) -> (i32, i32, i32) {
    %c0_i32 = arith.constant 0 : i32
    %c0_i32_0 = arith.constant 0 : i32
    return %arg0, %arg1, %c0_i32 : i32, i32, i32
  }
  func.func @transform_3(%arg0: i32, %arg1: i32) -> (i32, i32, i32) {
    %c0_i32 = arith.constant 0 : i32
    %c0_i32_0 = arith.constant 0 : i32
    %c0_i32_1 = arith.constant 0 : i32
    return %arg0, %c0_i32, %c0_i32_0 : i32, i32, i32
  }
  func.func @transform_4(%arg0: i32, %arg1: i32) -> (i32, i32) {
    %c0_i32 = arith.constant 0 : i32
    %c0_i32_0 = arith.constant 0 : i32
    %c0_i32_1 = arith.constant 0 : i32
    return %c0_i32, %c0_i32_0 : i32, i32
  }
  func.func @transform_5(%arg0: i32, %arg1: i32) -> (i32, i32) {
    %c0_i32 = arith.constant 0 : i32
    %c0_i32_0 = arith.constant 0 : i32
    %c0_i32_1 = arith.constant 0 : i32
    return %c0_i32, %c0_i32_0 : i32, i32
  }
  func.func @transform_6(%arg0: i32, %arg1: i32) -> (i32, i32) {
    %c0_i32 = arith.constant 0 : i32
    %c0_i32_0 = arith.constant 0 : i32
    %c0_i32_1 = arith.constant 0 : i32
    return %c0_i32, %c0_i32_0 : i32, i32
  }
  func.func @transform_7(%arg0: i32, %arg1: i32) -> (i32, i32) {
    %c0_i32 = arith.constant 0 : i32
    %c0_i32_0 = arith.constant 0 : i32
    %c0_i32_1 = arith.constant 0 : i32
    return %c0_i32, %c0_i32_0 : i32, i32
  }
  func.func @transform_8(%arg0: i32, %arg1: i32) -> (i32, i32) {
    %c0_i32 = arith.constant 0 : i32
    %c0_i32_0 = arith.constant 0 : i32
    %c0_i32_1 = arith.constant 0 : i32
    return %c0_i32, %c0_i32_0 : i32, i32
  }
  func.func @transform_9(%arg0: i32, %arg1: i32) -> (i32, i32) {
    %c0_i32 = arith.constant 0 : i32
    %c0_i32_0 = arith.constant 0 : i32
    %c0_i32_1 = arith.constant 0 : i32
    return %c0_i32, %c0_i32_0 : i32, i32
  }
  func.func @transform_10(%arg0: i32, %arg1: i32) -> (i32, i32) {
    %c0_i32 = arith.constant 0 : i32
    %c0_i32_0 = arith.constant 0 : i32
    %c0_i32_1 = arith.constant 0 : i32
    return %c0_i32, %c0_i32_0 : i32, i32
  }
  func.func @transform_11(%arg0: i32, %arg1: i32) -> (i32, i32) {
    %c0_i32 = arith.constant 0 : i32
    %c0_i32_0 = arith.constant 0 : i32
    %c0_i32_1 = arith.constant 0 : i32
    return %c0_i32, %c0_i32_0 : i32, i32
  }
  func.func @transform_12(%arg0: i32, %arg1: i32) -> (i32, i32) {
    %c0_i32 = arith.constant 0 : i32
    %c0_i32_0 = arith.constant 0 : i32
    %c0_i32_1 = arith.constant 0 : i32
    return %c0_i32, %c0_i32_0 : i32, i32
  }
  func.func @transform_13(%arg0: i32, %arg1: i32) -> (i32, i32) {
    %c0_i32 = arith.constant 0 : i32
    %c0_i32_0 = arith.constant 0 : i32
    %c0_i32_1 = arith.constant 0 : i32
    return %c0_i32, %c0_i32_0 : i32, i32
  }
  func.func @transform_14(%arg0: i32, %arg1: i32) -> (i32, i32) {
    %c0_i32 = arith.constant 0 : i32
    %c0_i32_0 = arith.constant 0 : i32
    %c0_i32_1 = arith.constant 0 : i32
    return %c0_i32, %c0_i32_0 : i32, i32
  }
  func.func @transform_15(%arg0: i32, %arg1: i32) -> (i32, i32) {
    %c0_i32 = arith.constant 0 : i32
    %c0_i32_0 = arith.constant 0 : i32
    %c0_i32_1 = arith.constant 0 : i32
    return %c0_i32, %c0_i32_0 : i32, i32
  }
  func.func @transform_16(%arg0: i32, %arg1: i32) -> (i32, i32) {
    %c0_i32 = arith.constant 0 : i32
    %c0_i32_0 = arith.constant 0 : i32
    %c0_i32_1 = arith.constant 0 : i32
    return %c0_i32, %c0_i32_0 : i32, i32
  }
  func.func @transform_17(%arg0: i32, %arg1: i32) -> (i32, i32) {
    %c0_i32 = arith.constant 0 : i32
    %c0_i32_0 = arith.constant 0 : i32
    %c0_i32_1 = arith.constant 0 : i32
    return %c0_i32, %c0_i32_0 : i32, i32
  }
  func.func @transform_18(%arg0: i32, %arg1: i32) -> (i32, i32, i32) {
    %c0_i32 = arith.constant 0 : i32
    %c0_i32_0 = arith.constant 0 : i32
    return %arg0, %arg1, %c0_i32 : i32, i32, i32
  }
}

</mosaic_0001>

<bundles_post_ra>
// kernel: tpu_custom_call.1
= control target key start
LH: loop header
LB: loop body
LE: loop exit
PB: predicated region body
PF: predicated region fallthrough
CT: control target
= control target key end

     0   :  { %s2908_s0 = inlined_call_operand.vmem [shape: f32[2,16,32], index: 0, kind: input, shape index: {}]   ;;  %s2909_s1 = inlined_call_operand.vmem [shape: f32[2,16,32], index: 1, kind: input, shape index: {}]   ;;  %s2910_s2 = inlined_call_operand.vmem [shape: f32[2,16,1], index: 2, kind: input, shape index: {}]   ;;  %s2911_s3 = inlined_call_operand.vmem [shape: f32[2,1,16], index: 3, kind: input, shape index: {}]   ;;  %s2912_s4 = inlined_call_operand.vmem [shape: f32[1,32], index: 4, kind: input, shape index: {}]   ;;  %s2913_s5 = inlined_call_operand.vmem [shape: f32[1,32], index: 5, kind: input, shape index: {}]   ;;  %s2914_s6 = inlined_call_operand.vmem [shape: bf16[32,32], index: 6, kind: input, shape index: {}]   ;;  %s2915_s7 = inlined_call_operand.vmem [shape: f32[32,1], index: 7, kind: input, shape index: {}]   ;;  %s2916_s8 = inlined_call_operand.vmem [shape: bf16[64,32], index: 8, kind: input, shape index: {}]   ;;  %s2917_s9 = inlined_call_operand.vmem [shape: f32[64,1], index: 9, kind: input, shape index: {}]   ;;  %s2918_s10 = inlined_call_operand.vmem [shape: bf16[32,32], index: 10, kind: input, shape index: {}]   ;;  %s2919_s11 = inlined_call_operand.vmem [shape: f32[1,32], index: 11, kind: input, shape index: {}]   ;;  %s2920_s12 = inlined_call_operand.vmem [shape: f32[1,32], index: 12, kind: input, shape index: {}]   ;;  %s2921_s13 = inlined_call_operand.vmem [shape: f32[1,32], index: 13, kind: input, shape index: {}]   ;;  %s2922_s14 = inlined_call_operand.vmem [shape: bf16[32,64], index: 14, kind: input, shape index: {}]   ;;  %s2923_s15 = inlined_call_operand.vmem [shape: f32[1,64], index: 15, kind: input, shape index: {}]   ;;  %s2924_s16 = inlined_call_operand.vmem [shape: bf16[64,32], index: 16, kind: input, shape index: {}]   ;;  %s2925_s17 = inlined_call_operand.vmem [shape: f32[1,32], index: 17, kind: input, shape index: {}]   ;;  %s2926_s18 = inlined_call_operand.hbm [shape: f32[2,16,32], index: 18, kind: output, shape index: {}]  }
   0x1   :  { %2944 = sst [smem:[#allocation18_spill]] %s2908_s0 }
   0x2   :  { %2945 = sst [smem:[#allocation19_spill]] %s2909_s1 }
   0x3   :  { %2946 = sst [smem:[#allocation20_spill]] %s2910_s2 }
   0x4   :  { %2947 = sst [smem:[#allocation21_spill]] %s2912_s4 }
   0x5   :  { %2948 = sst [smem:[#allocation22_spill]] %s2913_s5 }
   0x6   :  { %2949 = sst [smem:[#allocation23_spill]] %s2920_s12 }
   0x7   :  { %2950 = sst [smem:[#allocation24_spill]] %s2921_s13 }
   0x8   :  { %2951 = sst [smem:[#allocation25_spill]] %s2922_s14 }
   0x9   :  { %2952 = sst [smem:[#allocation26_spill]] %s2923_s15 }
   0xa   :  { %2953 = sst [smem:[#allocation27_spill]] %s2924_s16 }
   0xb   :  { %2954 = sst [smem:[#allocation28_spill]] %s2925_s17 }
   0xc   :  { %2955 = sst [smem:[#allocation29_spill]] %s2926_s18 }
   0xd   :  { %23 = vsyncpa [#allocation4], 0 }
   0xe   :  { %25 = vsyncpa [#allocation4 + $0x1], 0  ;;  %s2534_s27 = smov 0   ;;  %s2536_s28 = smov 0  }
   0xf   :  { %s2538_s29 = smov 0   ;;  %s2540_s30 = smov 0  }
  0x10   :  { %s2542_s0 = smov 0   ;;  %s2544_s19 = smov 0  }
  0x11   :  { %s2546_s1 = smov 0   ;;  %s2548_s20 = smov 0  }
  0x12 LB: > { %2956 = sst [smem:[#allocation6_spill]] %s2404_s27  ;;  %s2017_s21 = sadd.s32 4294967295, %s2432_s20   ;;  %s2432_s20 = sphi %s2548_s20, %s31_s20   ;;  %s2428_s1 = sphi %s2546_s1, %s2997_s1   ;;  %s2424_s19 = sphi %s2544_s19, %s2996_s19   ;;  %s2420_s0 = sphi %s2542_s0, %s2995_s0   ;;  %s2416_s30 = sphi %s2540_s30, %s2994_s30   ;;  %s2412_s29 = sphi %s2538_s29, %s2993_s29   ;;  %s2408_s28 = sphi %s2536_s28, %s2992_s28   ;;  %s2404_s27 = sphi %s2534_s27, %s2991_s27  }
  0x13   : > { %2957 = sst [smem:[#allocation7_spill]] %s2408_s28  ;;  %s2018_s22 = sadd.s32 4294967294, %s2432_s20  }
  0x14   : > { %2958 = sst [smem:[#allocation8_spill]] %s2412_s29  ;;  %s40_s2 = sadd.s32 1, %s2424_s19 }
  0x15   : > { %2959 = sst [smem:[#allocation9_spill]] %s2420_s0  ;;  %p41_p0 = scmp.ge.s32.totalorder %s40_s2, 2 }
  0x16   : > { %2960 = sst [smem:[#allocation10_spill]] %s2424_s19  ;;  %s43_s23 = sadd.s32 1, %s2428_s1 }
  0x17   : > { %2961 = sst [smem:[#allocation11_spill]] %s2428_s1  ;;  %p464_p1 = scmp.ne.s32.totalorder %s2412_s29, %s2408_s28 }
  0x18   : > { %2962 = sst [smem:[#allocation12_spill]] %s2432_s20  ;;  %p465_p2 = scmp.eq.s32.totalorder %s2017_s21, 3 }
  0x19   : > { %s2999_s2 = smov (%p41_p0, %s40_s2), 0  ;;  %s3001_s23 = smov (!%p41_p0, %s43_s23), %s2428_s1 }
  0x1a   : > { %2963 = sst [smem:[#allocation13_spill]] %s2999_s2  ;;  %s450_s24 = ssub.s32 %s2424_s19, %s2999_s2 }
  0x1b   : > { %p2585_p3 = por %p465_p2, %p464_p1  ;;  %p45_p4 = scmp.ge.s32.totalorder %s3001_s23, 2 }
  0x1c   : > { %p470_p5 = scmp.ne.s32.totalorder %s2408_s28, %s2404_s27  ;;  %p471_p6 = scmp.eq.s32.totalorder %s2018_s22, 3 }
  0x1d   : > { %s2964_s25 = scalar_select %p2585_p3, 1, 0 }
  0x1e   : > { %p2021_p7 = scmp.ge.s32.totalorder %s2432_s20, 1  ;;  %s3003_s23 = smov (%p45_p4, %s3001_s23), 0 }
  0x1f   : > { %2965 = sst [smem:[#allocation14_spill]] %s2964_s25  ;;  %p2594_p8 = por %p471_p6, %p470_p5 }
  0x20   : > { %2966 = sst [smem:[#allocation15_spill]] %s3003_s23  ;;  %p567_p9 = scmp.lt.s32.totalorder %s2432_s20, 5 }
  0x21   : > { %s2967_s26 = scalar_select %p2594_p8, 1, 0 }
  0x22   : > { %s449_s21 = ssub.s32 %s2428_s1, %s3003_s23  ;;  %s454_s18 = sadd.s32 1, %s2412_s29 }
  0x23   : > { %2968 = sst [smem:[#allocation16_spill]] %s2967_s26  ;;  %s451_s17 = sor.u32 %s450_s24, %s449_s21 }
  0x24   : > { %p568_p10 = pnand %p2021_p7, %p567_p9  ;;  %p452_p11 = scmp.eq.s32.totalorder %s451_s17, 0 }
  0x25   : > { %s2935_s22 = sand.u32 (!%p568_p10), 1, %s2408_s28   ;;  %p640_p12 = scmp.lt.s32.totalorder (!%p568_p10), %s2420_s0, 1 }
  0x26   : > { %s2603_s2 = scalar_select %p452_p11, %s2412_s29, %s454_s18  }
  0x27   : > { %571 = sbr.rel (%p568_p10) target bundleno = 3140 (0xc44), region = 92  ;;  %s2970_s4 = sld [smem:[#allocation21_spill]] (!%p568_p10) }
  0x28   : > { %2969 = sst [smem:[#allocation17_spill]] %s2603_s2  ;;  %s2971_s5 = sld [smem:[#allocation22_spill]] (!%p568_p10) }
  0x29   : > { %s2619_s17 = sshll.u32 (!%p568_p10), %s2935_s22, 3  ;;  %p647_p13 = scmp.lt.s32.totalorder (!%p568_p10), %s2416_s30, 1 }
  0x2a   : > { %s2972_s2 = sld [smem:[#allocation18_spill]] (!%p568_p10)  ;;  %s2973_s28 = sld [smem:[#allocation19_spill]] (!%p568_p10) }
  0x2b   : > { %s2974_s12 = sld [smem:[#allocation20_spill]] (!%p568_p10)  ;;  %s639_s14 = scalar_lea.vmem (!%p568_p10), [#allocation3], %s2619_s17 }
  0x2c   : > { %p2029_p0 = scmp.ne.s32.totalorder (!%p568_p10), %s2416_s30, 0 }
  0x2d   : > { %v2610_v0 = vld [vmem:[%s2970_s4] sm:$0x1] (!%p568_p10) }
  0x2e   : > { %v2615_v1 = vld [vmem:[%s2971_s5] sm:$0x1]  ;;  %s2623_s18 = scalar_select %p640_p12, %s2420_s0, 1 }
  0x2f   : > { %s648_s21 = scalar_select %p647_p13, %s2416_s30, 1 }
  0x30   : > { %s2080_s1 = sshll.u32 %s2623_s18, 4  ;;  %s2025_s27 = sshll.u32 %s2623_s18, 1  ;;  %vm673_vm0 = vcmask (!%p2029_p0), 261120   ;;  %v2290_v16 = vld [vmem:[%s2916_s8] sm:$0xff] (!%p2029_p0)   ;;  %v2291_v17 = vld [vmem:[%s2916_s8 + $0x10] sm:$0xff] (!%p2029_p0)   ;;  %v727_v18 = vld [vmem:[%s2917_s9 + $0x8] sm:$0xff] (!%p2029_p0)  ;;  %v702_v31 = vlaneseq (!%p2029_p0) }
  0x31   : > { %s644_s29 = scalar_lea.vmem %s2972_s2, %s2080_s1  ;;  %s650_s23 = sadd.s32 %s2025_s27, %s648_s21  ;;  %2118 = vmatprep.mubr.msk.bf16.mxu0 (!%p2029_p0), %vm673_vm0, %v2290_v16  ;;  %2122 = vmatprep.mubr.msk.bf16.mxu1 (!%p2029_p0), %vm673_vm0, %v2291_v17  ;;  %v2434_v19 = vmov (!%p2029_p0), 0   ;;  %v726_v20 = vld [vmem:[%s2917_s9] sm:$0xff] (!%p2029_p0)  ;;  %v728_v21 = vld [vmem:[%s2917_s9 + $0x10] sm:$0xff] (!%p2029_p0)  ;;  %v729_v22 = vld [vmem:[%s2917_s9 + $0x18] sm:$0xff] (!%p2029_p0)  ;;  %vm878_vm1 = vcmask (!%p2029_p0), 130048  }
  0x32   : > { %s2026_s24 = sshll.u32 %s650_s23, 3  ;;  %s663_s22 = scalar_lea.vmem %s2911_s3, %s2623_s18  ;;  %v671_v2 = vld [vmem:[%s644_s29] sm:$0xff] (!%p2029_p0)  ;;  %v672_v3 = vld [vmem:[%s644_s29 + $0x8] sm:$0xff] (!%p2029_p0)  ;;  %2289 = vset.pattern.permute.xlu1 (!%p2029_p0), %v2434_v19  ;;  %2288 = vset.pattern.permute.xlu0 (!%p2029_p0), %v2434_v19  ;;  %v732_v25 = vld [vmem:[%s2917_s9 + $0x30] sm:$0xff] (!%p2029_p0)  ;;  %v703_v34 = vshrl.u32 (!%p2029_p0), %v702_v31, 7 }
  0x33   : > { %s2638_s15 = scalar_lea.vmem %s2973_s28, %s2026_s24  ;;  %s2643_s16 = scalar_lea.vmem %s2974_s12, %s2026_s24  ;;  %v674_v4 = vsel (!%p2029_p0), %vm673_vm0, %v671_v2, 0.0  ;;  %v677_v5 = vsel (!%p2029_p0), %vm673_vm0, %v672_v3, 0.0  ;;  %v730_v23 = vld [vmem:[%s2917_s9 + $0x20] sm:$0xff] (!%p2029_p0)  ;;  %v731_v24 = vld [vmem:[%s2917_s9 + $0x28] sm:$0xff] (!%p2029_p0)  ;;  %v733_v26 = vld [vmem:[%s2917_s9 + $0x38] sm:$0xff] (!%p2029_p0) }
  0x34   : > { %670 = sbr.rel (%p2029_p0) target bundleno = 598 (0x256), region = 96  ;;  %675 = vadd.xlane.f32.xlu0 (!%p2029_p0), %v674_v4  ;;  %v704_v35 = vsub.s32 (!%p2029_p0), 0, %v703_v34  ;;  %v2292_v48 = vld [vmem:[%s2916_s8 + $0x8] sm:$0xff] (!%p2029_p0)   ;;  %v2293_v49 = vld [vmem:[%s2916_s8 + $0x18] sm:$0xff] (!%p2029_p0)  }
  0x36   : > { %v705_v38 = vrot.slane (!%p2029_p0), %v2610_v0, %v704_v35  ;;  %v713_v42 = vrot.slane (!%p2029_p0), %v2615_v1, %v704_v35 }
  0x38   : > { %678 = vadd.xlane.f32.xlu0 (!%p2029_p0), %v677_v5 }
  0x4e   : > { %736 = vperm.xlu0 %2288, %v726_v20  }
  0xc1   : > { %v676_v6 = vpop.xlane.xlu0 %675 }
  0xc2   : > { %v681_v7 = vmul.f32 0.03125, %v676_v6 }
  0xc4   : > { %v683_v8 = vsub.f32 %v671_v2, %v681_v7 }
  0xc5   : > { %v679_v9 = vpop.xlane.xlu0 %678 }
  0xc6   : > { %v682_v10 = vmul.f32 0.03125, %v679_v9  ;;  %v685_v11 = vmul.f32 %v683_v8, %v683_v8 }
  0xc8   : > { %v684_v12 = vsub.f32 %v672_v3, %v682_v10  ;;  %v687_v13 = vsel %vm673_vm0, %v685_v11, 0.0 }
  0xc9   : > { %688 = vadd.xlane.f32.xlu1 %v687_v13 }
  0xca   : > { %v686_v14 = vmul.f32 %v684_v12, %v684_v12 }
  0xcc   : > { %v690_v15 = vsel %vm673_vm0, %v686_v14, 0.0 }
  0xcd   : > { %691 = vadd.xlane.f32.xlu1 %v690_v15  ;;  %v737_v57 = vpop.permute.xlu0 %736 }
  0xde   : > { %741 = vperm.xlu1 %2289, %v727_v18  }
  0xe2   : > { %746 = vperm.xlu1 %2289, %v728_v21  }
  0xe6   : > { %751 = vperm.xlu1 %2289, %v729_v22  }
  0xea   : > { %756 = vperm.xlu1 %2289, %v730_v23  }
  0xee   : > { %761 = vperm.xlu1 %2289, %v731_v24  }
  0xf2   : > { %766 = vperm.xlu1 %2289, %v732_v25  }
  0xf6   : > { %771 = vperm.xlu1 %2289, %v733_v26  }
 0x156   : > { %v689_v27 = vpop.xlane.xlu1 %688 }
 0x157   : > { %v693_v28 = vmul.f32 0.03125, %v689_v27 }
 0x159   : > { %v695_v29 = vadd.f32 1e-06, %v693_v28 }
 0x15a   : > { %v692_v30 = vpop.xlane.xlu1 %691 }
 0x15b   : > { %2294 = vrsqrt.f32 %v695_v29  ;;  %v694_v32 = vmul.f32 0.03125, %v692_v30 }
 0x15d   : > { %v696_v33 = vadd.f32 1e-06, %v694_v32 }
 0x15e   : > { %v742_v50 = vpop.permute.xlu1 %741 }
 0x15f   : > { %2296 = vrsqrt.f32 %v696_v33 }
 0x162   : > { %v747_v51 = vpop.permute.xlu1 %746 }
 0x165   : > { %v2295_v36 = vpop.eup %2294 }
 0x166   : > { %v699_v37 = vmul.f32 %v2295_v36, %v683_v8  ;;  %v752_v52 = vpop.permute.xlu1 %751 }
 0x168   : > { %v707_v41 = vmul.f32 %v705_v38, %v699_v37 }
 0x169   : > { %v2297_v39 = vpop.eup %2296 }
 0x16a   : > { %v700_v40 = vmul.f32 %v2297_v39, %v684_v12  ;;  %v715_v44 = vadd.f32 %v713_v42, %v707_v41  ;;  %v757_v53 = vpop.permute.xlu1 %756 }
 0x16c   : > { %v708_v43 = vmul.f32 %v705_v38, %v700_v40 }
 0x16e   : > { %v716_v45 = vadd.f32 %v713_v42, %v708_v43  ;;  %v762_v54 = vpop.permute.xlu1 %761 }
 0x170   : > { %v717_v46 = vpack.c.bf16 %v716_v45, %v715_v44 }
 0x172   : > { %2210 = vmatprep.subr.msk.bf16.mxu0 %vm673_vm0, %v717_v46  ;;  %2211 = vmatprep.subr.msk.bf16.mxu1 %vm673_vm0, %v717_v46  ;;  %v807_v47 = vsel %vm673_vm0, %v717_v46, 0  ;;  %v767_v55 = vpop.permute.xlu1 %766 }
 0x173   : > { %2117 = vmatpush3.bf16.xpose.msra.mxu0 %v807_v47  ;;  %2209 = vmatpush3.bf16.xpose.msra.mxu1 %v807_v47 }
 0x176   : > { %v772_v56 = vpop.permute.xlu1 %771 }
 0x17a   : > { %2119 = vmatmul.mubr.msk.bf16.vlgmr.msra.gmra.mrb[0].mxu0 %vm673_vm0, %v2292_v48  ;;  %2123 = vmatmul.mubr.msk.bf16.vlgmr.msra.gmra.mrb[0].mxu1 %vm673_vm0, %v2293_v49 }
 0x24d   : > { %v2120_v58 = vpop.f32.mrb[0].mxu0  ;;  %v2124_v59 = vpop.f32.mrb[0].mxu1 }
 0x24e   : > { %v843_v60 = vpop.f32.mrb[1].mxu0  ;;  %v859_v61 = vpop.f32.mrb[1].mxu1  ;;  %v852_v2 = vadd.f32 %v2120_v58, %v747_v51  ;;  %v868_v3 = vadd.f32 %v2124_v59, %v767_v55 }
 0x24f   : > { %v2121_v62 = vpop.f32.mrb[2].mxu0  ;;  %v2125_v63 = vpop.f32.mrb[2].mxu1  ;;  %v860_v8 = vadd.f32 %v859_v61, %v757_v53  ;;  %v844_v9 = vadd.f32 %v843_v60, %v737_v57 }
 0x250   : > { %v855_v4 = vadd.f32 %v2121_v62, %v752_v52  ;;  %v871_v5 = vadd.f32 %v2125_v63, %v772_v56  ;;  %v846_v6 = vpop.f32.mrb[3].mxu0  ;;  %v862_v7 = vpop.f32.mrb[3].mxu1 }
 0x251   : > { %v847_v10 = vadd.f32 %v846_v6, %v742_v50  ;;  %v863_v11 = vadd.f32 %v862_v7, %v762_v54 }
 0x252   : > { %v875_v12 = vpack.c.bf16 %v855_v4, %v852_v2  ;;  %v877_v13 = vpack.c.bf16 %v871_v5, %v868_v3 }
 0x253   : > { %v874_v14 = vpack.c.bf16 %v847_v10, %v844_v9  ;;  %v876_v15 = vpack.c.bf16 %v863_v11, %v860_v8 }
 0x254   : > { %880 = vst.msk [vmem:[#allocation2 + $0x8] sm:$0xff] %vm878_vm1, %v875_v12  ;;  %882 = vst.msk [vmem:[#allocation2 + $0x18] sm:$0xff] %vm878_vm1, %v877_v13 }
 0x255   : > { %879 = vst.msk [vmem:[#allocation2] sm:$0xff] %vm878_vm1, %v874_v14  ;;  %881 = vst.msk [vmem:[#allocation2 + $0x10] sm:$0xff] %vm878_vm1, %v876_v15 }
 0x256 PF: > { %v2701_v16 = vld [vmem:[%s2638_s15] sm:$0xff]  ;;  %vm884_vm2 = vcmask 261120   ;;  %v920_v25 = vld [vmem:[%s2915_s7 + $0x10] sm:$0xff]  ;;  %v2435_v26 = vmov 0   ;;  %v919_v27 = vld [vmem:[%s2915_s7 + $0x8] sm:$0xff]  ;;  %v900_v31 = vlaneseq  ;;  %vm1186_vm3 = vcmask 1043456  }
 0x257   : > { %v885_v17 = vsel %vm884_vm2, %v2701_v16, 0.0  ;;  %v2300_v23 = vld [vmem:[%s2914_s6] sm:$0xff]   ;;  %2298 = vset.pattern.permute.xlu1 %v2435_v26  ;;  %2299 = vset.pattern.permute.xlu0 %v2435_v26  ;;  %v921_v28 = vld [vmem:[%s2915_s7 + $0x18] sm:$0xff]  ;;  %v2301_v43 = vld [vmem:[%s2914_s6 + $0x8] sm:$0xff]   ;;  %vm2437_vm4 = vmmov 0   ;;  %vm1182_vm5 = vcmask 64512  }
 0x258   : > { %886 = vadd.xlane.f32.xlu0 %v885_v17  ;;  %2128 = vmatprep.mubr.msk.bf16.mxu0 %vm884_vm2, %v2300_v23  ;;  %v918_v24 = vld [vmem:[%s2915_s7] sm:$0xff]  ;;  %v901_v33 = vshrl.u32 %v900_v31, 7  ;;  %vm1368_vm6 = vcmask 130048   ;;  %s2975_s20 = sld [smem:[#allocation25_spill]]  ;;  %s2977_s27 = sld [smem:[#allocation27_spill]]  ;;  %vm1838_vm7 = vcmask 523264  }
 0x259   : > { %924 = vperm.xlu1 %2298, %v918_v24   ;;  %v1166_v58 = vld [vmem:[%s2643_s16] sm:$0xff]  ;;  %s2979_s5 = sld [smem:[#allocation23_spill]]  ;;  %s2980_s12 = sld [smem:[#allocation24_spill]] }
 0x25a   : > { %v902_v34 = vsub.s32 0, %v901_v33  ;;  %v2050_v12 = vld [vmem:[%s663_s22] ss:$0 sm:$0xff]  ;;  %s2981_s29 = sld [smem:[#allocation9_spill]]  ;;  %s2982_s25 = sld [smem:[#allocation26_spill]] }
 0x25b   : > { %v1143_v63 = vld [vmem:[#allocation2 + $0x8] sm:$0xff]  ;;  %s2983_s26 = sld [smem:[#allocation7_spill]]  ;;  %s2984_s4 = sld [smem:[#allocation28_spill]] }
 0x25c   : > { %v903_v35 = vrot.slane %v2610_v0, %v902_v34  ;;  %v910_v38 = vrot.slane %v2615_v1, %v902_v34  ;;  %v1142_v44 = vld [vmem:[#allocation2] sm:$0xff]  ;;  %v2436_v0 = vmov 0.0   ;;  %v2044_v3 = vcombine.low %v1143_v63, %v1143_v63  ;;  %s1900_s22 = sshll.u32 %s639_s14, 4  ;;  %s2986_s13 = sld [smem:[#allocation29_spill]]  ;;  %s2852_s22 = int_to_ptr.vmem [resolvable:$true] %s1900_s22 }
 0x25d   : > { %929 = vperm.xlu1 %2298, %v919_v27   ;;  %2132 = vmatprep.subr.bf16.mxu1 %v2436_v0  ;;  %v2042_v1 = vcombine.low %v1142_v44, %v1142_v44  ;;  %v2043_v59 = vcombine.high %v1142_v44, %v1142_v44  ;;  %v2045_v7 = vcombine.high %v1143_v63, %v1143_v63  ;;  %s2338_s0 = scalar_lea.vmem %s2852_s22, 128  ;;  %s2438_s1 = smov [#allocation3]  }
 0x25e   : > { %2134 = vmatprep.mubr.msk.bf16.mxu1 %vm2437_vm4, %v2436_v0  ;;  %v1280_v5 = vsel %vm1186_vm3, %v2044_v3, 0  ;;  %s2976_s15 = smov %s2975_s20  ;;  %s2978_s23 = smov %s2977_s27 }
 0x25f   : > { %v1188_v45 = vsel %vm1186_vm3, %v2042_v1, 0  ;;  %v1234_v62 = vsel %vm1186_vm3, %v2043_v59, 0  ;;  %v1326_v9 = vsel %vm1186_vm3, %v2045_v7, 0  ;;  %p2339_p1 = scmp.ne.s32.totalorder %s2852_s22, %s2338_s0 }
 0x260   : > { %2133 = vmatpush3.bf16.msra.mxu1 %v1188_v45  ;;  %s2076_s21 = sshll.u32 %s2981_s29, 1 }
 0x261   : > { %939 = vperm.xlu1 %2298, %v921_v28   ;;  %2138 = vmatprep.subr.bf16.mxu1 %v2436_v0  ;;  %p2340_p2 = pnand %p2339_p1, %p2585_p3 }
 0x263   : > { %p2341_p4 = pneg %p2340_p2 }
 0x2d8   : > { %v925_v46 = vpop.permute.xlu1 %924 }
 0x2dc   : > { %v930_v48 = vpop.permute.xlu1 %929 }
 0x2e0   : > { %v940_v56 = vpop.permute.xlu1 %939 }
 0x2e5   : > { %v887_v18 = vpop.xlane.xlu0 %886 }
 0x2e6   : > { %v889_v19 = vmul.f32 0.03125, %v887_v18 }
 0x2e8   : > { %v890_v20 = vsub.f32 %v2701_v16, %v889_v19 }
 0x2ea   : > { %v891_v21 = vmul.f32 %v890_v20, %v890_v20 }
 0x2ec   : > { %v892_v22 = vsel %vm884_vm2, %v891_v21, 0.0 }
 0x2ed   : > { %893 = vadd.xlane.f32.xlu0 %v892_v22 }
 0x303   : > { %934 = vperm.xlu0 %2299, %v920_v25  }
 0x37a   : > { %v894_v29 = vpop.xlane.xlu0 %893 }
 0x37b   : > { %v895_v30 = vmul.f32 0.03125, %v894_v29 }
 0x37d   : > { %v896_v32 = vadd.f32 1e-06, %v895_v30 }
 0x37f   : > { %2318 = vrsqrt.f32 %v896_v32 }
 0x382   : > { %v935_v52 = vpop.permute.xlu0 %934 }
 0x389   : > { %v2319_v36 = vpop.eup %2318 }
 0x38a   : > { %v898_v37 = vmul.f32 %v2319_v36, %v890_v20 }
 0x38c   : > { %v905_v39 = vmul.f32 %v903_v35, %v898_v37 }
 0x38e   : > { %v912_v40 = vadd.f32 %v910_v38, %v905_v39 }
 0x390   : > { %v917_v41 = vpack.c.bf16 %v912_v40, %v912_v40 }
 0x392   : > { %2212 = vmatprep.subr.msk.bf16.mxu0 %vm884_vm2, %v917_v41  ;;  %v959_v42 = vsel %vm884_vm2, %v917_v41, 0 }
 0x393   : > { %2127 = vmatpush3.bf16.xpose.msra.mxu0 %v959_v42 }
 0x394   : > { %2156 = vmatprep.subr.bf16.mxu0 %v2436_v0 }
 0x39a   : > { %2129 = vmatmul.mubr.msk.bf16.vlgmr.msra.gmra.mrb[0].mxu0 %vm884_vm2, %v2301_v43 }
 0x39b   : > { %2158 = vmatprep.mubr.msk.bf16.mxu0 %vm2437_vm4, %v2436_v0 }
 0x46d   : > { %v2130_v47 = vpop.f32.mrb[0].mxu0 }
 0x46e   : > { %v995_v49 = vpop.f32.mrb[1].mxu0  ;;  %v1004_v55 = vadd.f32 %v2130_v47, %v935_v52 }
 0x46f   : > { %v996_v50 = vadd.f32 %v995_v49, %v925_v46  ;;  %v2131_v51 = vpop.f32.mrb[2].mxu0 }
 0x470   : > { %v998_v53 = vpop.f32.mrb[3].mxu0  ;;  %v1007_v57 = vadd.f32 %v2131_v51, %v940_v56 }
 0x471   : > { %v999_v54 = vadd.f32 %v998_v53, %v930_v48  ;;  %1010 = vxpose.xlu1.b32.start.end [1/1] (short) (narrow) %v996_v50, 8 }
 0x473   : > { %1042 = vxpose.xlu0.b32.start.end [1/1] (short) (narrow) %v999_v54, 8 }
 0x475   : > { %1074 = vxpose.xlu1.b32.start.end [1/1] (short) (narrow) %v1004_v55, 8 }
 0x479   : > { %1106 = vxpose.xlu1.b32.start.end [1/1] (short) (narrow) %v1007_v57, 8 }
 0x497   : > { %1170 = vperm.xlu1 %2298, %v1166_v58  }
 0x4f1   : > { %v1026_v60 = vpop.trf.xlu1 }
 0x4f2   : > { %v1138_v61 = vpack.c.bf16 %v1026_v60, %v1026_v60 }
 0x4f3   : > { %v1058_v2 = vpop.trf.xlu0 }
 0x4f4   : > { %2135 = vmatmul.mubr.msk.bf16.vlgmr.msra.gmra.mrb[0].mxu1 %vm1182_vm5, %v1138_v61  ;;  %v1139_v4 = vpack.c.bf16 %v1058_v2, %v1058_v2 }
 0x4f5   : > { %2139 = vmatpush3.bf16.msra.mxu1 %v1234_v62  ;;  %2140 = vmatprep.mubr.msk.bf16.mxu1 %vm2437_vm4, %v2436_v0  ;;  %v1090_v6 = vpop.trf.xlu1 }
 0x4f6   : > { %2144 = vmatprep.subr.bf16.mxu1 %v2436_v0  ;;  %v1140_v8 = vpack.c.bf16 %v1090_v6, %v1090_v6  ;;  %v1144_v6 = vld [vmem:[#allocation2 + $0x10] sm:$0xff] }
 0x4f9   : > { %v1122_v10 = vpop.trf.xlu1 }
 0x4fa   : > { %v1141_v11 = vpack.c.bf16 %v1122_v10, %v1122_v10 }
 0x4fc   : > { %2141 = vmatmul.mubr.msk.bf16.vlgmr.msra.gmra.mrb[4].mxu1 %vm1182_vm5, %v1139_v4 }
 0x4fd   : > { %2145 = vmatpush3.bf16.msra.mxu1 %v1280_v5  ;;  %2146 = vmatprep.mubr.msk.bf16.mxu1 %vm2437_vm4, %v2436_v0 }
 0x4fe   : > { %2150 = vmatprep.subr.bf16.mxu1 %v2436_v0 }
 0x504   : > { %2147 = vmatmul.mubr.msk.bf16.vlgmr.msra.gmra.mrb[8].mxu1 %vm1182_vm5, %v1140_v8 }
 0x505   : > { %2151 = vmatpush3.bf16.msra.mxu1 %v1326_v9  ;;  %2152 = vmatprep.mubr.msk.bf16.mxu1 %vm2437_vm4, %v2436_v0  ;;  %v2046_v9 = vcombine.low %v1144_v6, %v1144_v6 }
 0x506   : > { %2162 = vmatprep.subr.bf16.mxu1 %v2436_v0 }
 0x50c   : > { %2153 = vmatmul.mubr.msk.bf16.vlgmr.msra.gmra.mrb[12].mxu1 %vm1182_vm5, %v1141_v11 }
 0x50d   : > { %2164 = vmatprep.mubr.msk.bf16.mxu1 %vm2437_vm4, %v2436_v0 }
 0x516   : > { %v1171_v13 = vpop.permute.xlu1 %1170 }
 0x517   : > { %v1179_v14 = vmul.f32 %v2050_v12, %v1171_v13 }
 0x519   : > { %v1180_v15 = vsub.f32 1.0, %v1179_v14 }
 0x51b   : > { %v1181_v17 = vmul.f32 -1e+09, %v1180_v15  ;;  %v2047_v15 = vcombine.high %v1144_v6, %v1144_v6 }
 0x5c7   : > { %v1224_v18 = vpop.f32.mrb[0].mxu1 }
 0x5c8   : > { %v1225_v19 = vadd.f32 %v1224_v18, %v1181_v17  ;;  %v2136_v20 = vpop.f32.mrb[1].mxu1 }
 0x5c9   : > { %v1227_v21 = vpop.f32.mrb[2].mxu1 }
 0x5ca   : > { %v2137_v22 = vpop.f32.mrb[3].mxu1  ;;  %v1369_v23 = vsel %vm1368_vm6, %v1225_v19, -inf }
 0x5cb   : > { %1370 = vmax.xlane.f32.xlu0 %v1369_v23 }
 0x5cf   : > { %v1270_v24 = vpop.f32.mrb[4].mxu1 }
 0x5d0   : > { %v1271_v25 = vadd.f32 %v1270_v24, %v1181_v17  ;;  %v2142_v26 = vpop.f32.mrb[5].mxu1 }
 0x5d1   : > { %v1273_v27 = vpop.f32.mrb[6].mxu1  ;;  %v2310_v26 = vld [vmem:[%s2918_s10] sm:$0xff]  }
 0x5d2   : > { %v2143_v28 = vpop.f32.mrb[7].mxu1  ;;  %v1372_v29 = vsel %vm1368_vm6, %v1271_v25, -inf  ;;  %v2311_v27 = vld [vmem:[%s2918_s10 + $0x8] sm:$0xff]  }
 0x5d3   : > { %1373 = vmax.xlane.f32.xlu1 %v1372_v29 }
 0x5d7   : > { %v1316_v30 = vpop.f32.mrb[8].mxu1 }
 0x5d8   : > { %v1317_v31 = vadd.f32 %v1316_v30, %v1181_v17  ;;  %v2148_v32 = vpop.f32.mrb[9].mxu1 }
 0x5d9   : > { %v1319_v33 = vpop.f32.mrb[10].mxu1 }
 0x5da   : > { %v2149_v34 = vpop.f32.mrb[11].mxu1  ;;  %v1375_v35 = vsel %vm1368_vm6, %v1317_v31, -inf }
 0x5db   : > { %1376 = vmax.xlane.f32.xlu0 %v1375_v35 }
 0x5df   : > { %v1362_v36 = vpop.f32.mrb[12].mxu1 }
 0x5e0   : > { %v1363_v37 = vadd.f32 %v1362_v36, %v1181_v17  ;;  %v2154_v38 = vpop.f32.mrb[13].mxu1 }
 0x5e1   : > { %v1365_v39 = vpop.f32.mrb[14].mxu1 }
 0x5e2   : > { %v2155_v40 = vpop.f32.mrb[15].mxu1  ;;  %v1378_v41 = vsel %vm1368_vm6, %v1363_v37, -inf }
 0x5e3   : > { %1379 = vmax.xlane.f32.xlu1 %v1378_v41 }
 0x658   : > { %v1371_v42 = vpop.xlane.xlu0 %1370 }
 0x659   : > { %v1381_v43 = vsub.f32 %v1225_v19, %v1371_v42  ;;  %v1145_v19 = vld [vmem:[#allocation2 + $0x18] sm:$0xff] }
 0x65a   : > { %v2048_v22 = vcombine.low %v1145_v19, %v1145_v19 }
 0x65b   : > { %v1385_v44 = vmul.f32 1.442695, %v1381_v43 }
 0x65d   : > { %2320 = vpow2.f32 %v1385_v44 }
 0x660   : > { %v1374_v1 = vpop.xlane.xlu1 %1373 }
 0x661   : > { %v1382_v45 = vsub.f32 %v1271_v25, %v1374_v1  ;;  %v2049_v25 = vcombine.high %v1145_v19, %v1145_v19 }
 0x663   : > { %v1387_v46 = vmul.f32 1.442695, %v1382_v45  ;;  %v2059_v45 = vld [vmem:[%s2919_s11] ss:$0 sm:$0xff] }
 0x665   : > { %2322 = vpow2.f32 %v1387_v46 }
 0x667   : > { %v2321_v47 = vpop.eup %2320 }
 0x668   : > { %v1377_v48 = vpop.xlane.xlu0 %1376  ;;  %v1393_v49 = vsel %vm1368_vm6, %v2321_v47, 0.0 }
 0x669   : > { %v1383_v50 = vsub.f32 %v1317_v31, %v1377_v48  ;;  %1394 = vadd.xlane.f32.xlu0 %v1393_v49 }
 0x66b   : > { %v1389_v51 = vmul.f32 1.442695, %v1383_v50 }
 0x66d   : > { %2324 = vpow2.f32 %v1389_v51 }
 0x66f   : > { %v2323_v52 = vpop.eup %2322 }
 0x670   : > { %v1380_v53 = vpop.xlane.xlu1 %1379  ;;  %v1396_v54 = vsel %vm1368_vm6, %v2323_v52, 0.0 }
 0x671   : > { %v1384_v55 = vsub.f32 %v1363_v37, %v1380_v53  ;;  %1397 = vadd.xlane.f32.xlu1 %v1396_v54 }
 0x673   : > { %v1391_v56 = vmul.f32 1.442695, %v1384_v55 }
 0x675   : > { %2326 = vpow2.f32 %v1391_v56 }
 0x677   : > { %v2325_v57 = vpop.eup %2324 }
 0x678   : > { %v1399_v58 = vsel %vm1368_vm6, %v2325_v57, 0.0 }
 0x679   : > { %1400 = vadd.xlane.f32.xlu0 %v1399_v58  ;;  %v2312_v58 = vld [vmem:[%s2975_s20] sm:$0xff]   ;;  %s2342_s20 = sshll.u32 %s2438_s1, 4  ;;  %s2343_s20 = int_to_ptr.vmem [resolvable:$false] %s2342_s20 }
 0x67a   : > { %s2344_s2 = scalar_lea.vmem %s2343_s20, 256  ;;  %p2345_p5 = scmp.lt.s32.totalorder %s2852_s22, %s2343_s20 }
 0x67b   : > { %p2346_p6 = scmp.lt.s32.totalorder %s2344_s2, %s2338_s0 }
 0x67d   : > { %p2347_p7 = por %p2346_p6, %p2345_p5 }
 0x67f   : > { %v2327_v59 = vpop.eup %2326  ;;  %p2348_p9 = pnand %p2347_p7, %p2341_p4 }
 0x680   : > { %v1402_v60 = vsel %vm1368_vm6, %v2327_v59, 0.0 }
 0x681   : > { %1403 = vadd.xlane.f32.xlu1 %v1402_v60  ;;  %v2315_v60 = vld [vmem:[%s2978_s23 + $0x8] sm:$0xff]  }
 0x6f6   : > { %v1395_v61 = vpop.xlane.xlu0 %1394 }
 0x6f7   : > { %2328 = vrcp.f32 %v1395_v61 }
 0x6fe   : > { %v1398_v62 = vpop.xlane.xlu1 %1397 }
 0x6ff   : > { %2330 = vrcp.f32 %v1398_v62 }
 0x701   : > { %v2329_v63 = vpop.eup %2328 }
 0x702   : > { %v1409_v2 = vmul.f32 %v2329_v63, %v2321_v47 }
 0x704   : > { %v1413_v3 = vpack.c.bf16 %v1409_v2, %v1409_v2 }
 0x706   : > { %v1401_v4 = vpop.xlane.xlu0 %1400  ;;  %v1421_v5 = vsel %vm1368_vm6, %v1413_v3, 0  ;;  %v2063_v3 = vld [vmem:[%s2979_s5] ss:$0 sm:$0xff] }
 0x707   : > { %2332 = vrcp.f32 %v1401_v4  ;;  %2157 = vmatpush3.bf16.xpose.msra.mxu0 %v1421_v5  ;;  %v2064_v5 = vld [vmem:[%s2980_s12] ss:$0 sm:$0xff] }
 0x708   : > { %2168 = vmatprep.subr.bf16.mxu0 %v2436_v0 }
 0x709   : > { %v2331_v7 = vpop.eup %2330 }
 0x70a   : > { %v1410_v8 = vmul.f32 %v2331_v7, %v2323_v52 }
 0x70c   : > { %v1414_v10 = vpack.c.bf16 %v1410_v8, %v1410_v8 }
 0x70e   : > { %v1404_v11 = vpop.xlane.xlu1 %1403  ;;  %v1467_v12 = vsel %vm1368_vm6, %v1414_v10, 0  ;;  %2159 = vmatmul.mubr.msk.bf16.vlgmr.msra.gmra.mrb[4].mxu0 %vm1368_vm6, %v2046_v9  ;;  %v2316_v9 = vld [vmem:[%s2978_s23 + $0x10] sm:$0xff]   ;;  %v2317_v10 = vld [vmem:[%s2978_s23 + $0x18] sm:$0xff]  }
 0x70f   : > { %2334 = vrcp.f32 %v1404_v11  ;;  %2163 = vmatpush3.bf16.xpose.msra.mxu1 %v1467_v12  ;;  %2170 = vmatprep.mubr.msk.bf16.mxu0 %vm2437_vm4, %v2436_v0  ;;  %v2065_v11 = vld [vmem:[%s2982_s25] ss:$0 sm:$0xff] }
 0x710   : > { %2174 = vmatprep.subr.bf16.mxu1 %v2436_v0 }
 0x711   : > { %v2333_v13 = vpop.eup %2332 }
 0x712   : > { %v1411_v14 = vmul.f32 %v2333_v13, %v2325_v57 }
 0x714   : > { %v1415_v17 = vpack.c.bf16 %v1411_v14, %v1411_v14 }
 0x716   : > { %v1513_v18 = vsel %vm1368_vm6, %v1415_v17, 0  ;;  %2165 = vmatmul.mubr.msk.bf16.vlgmr.msra.gmra.mrb[16].mxu1 %vm1368_vm6, %v2047_v15 }
 0x717   : > { %2169 = vmatpush3.bf16.xpose.msra.mxu0 %v1513_v18  ;;  %2176 = vmatprep.mubr.msk.bf16.mxu1 %vm2437_vm4, %v2436_v0 }
 0x718   : > { %2180 = vmatprep.subr.bf16.mxu0 %v2436_v0 }
 0x719   : > { %v2335_v20 = vpop.eup %2334 }
 0x71a   : > { %v1412_v21 = vmul.f32 %v2335_v20, %v2327_v59  ;;  %v2314_v59 = vld [vmem:[%s2977_s27] sm:$0xff]   ;;  %s1896_s27 = sadd.s32 %s2416_s30, %s2076_s21  ;;  %s2987_s30 = sand.u32 1, %s2983_s26  }
 0x71b   : > { %s2077_s5 = sshll.u32 %s1896_s27, 7  ;;  %s1885_s29 = scalar_lea.sflag [#allocation4], %s2987_s30 }
 0x71c   : > { %v1416_v23 = vpack.c.bf16 %v1412_v21, %v1412_v21  ;;  %s2850_s28 = scalar_lea.hbm %s2986_s13, %s2077_s5 }
 0x71e   : > { %v1559_v24 = vsel %vm1368_vm6, %v1416_v23, 0  ;;  %2171 = vmatmul.mubr.msk.bf16.vlgmr.msra.gmra.mrb[8].mxu0 %vm1368_vm6, %v2048_v22 }
 0x71f   : > { %2175 = vmatpush3.bf16.xpose.msra.mxu1 %v1559_v24  ;;  %2184 = vmatprep.mubr.msk.bf16.mxu0 %vm2437_vm4, %v2436_v0 }
 0x720   : > { %2188 = vmatprep.subr.bf16.mxu1 %v2436_v0  ;;  %2181 = vmatpush3.bf16.msra.mxu0 %v2310_v26 }
 0x721   : > { %2182 = vmatprep.subr.bf16.mxu0 %v2436_v0 }
 0x724   : > { %2183 = vmatpush3.bf16.msra.mxu0 %v2311_v27 }
 0x725   : > { %2196 = vmatprep.subr.bf16.mxu0 %v2436_v0 }
 0x726   : > { %2177 = vmatmul.mubr.msk.bf16.vlgmr.msra.gmra.mrb[20].mxu1 %vm1368_vm6, %v2049_v25 }
 0x727   : > { %2192 = vmatprep.mubr.msk.bf16.mxu1 %vm2437_vm4, %v2436_v0  ;;  %2189 = vmatpush3.bf16.msra.mxu1 %v2312_v58 }
 0x728   : > { %2190 = vmatprep.subr.bf16.mxu1 %v2436_v0 }
 0x7e1   : > { %v1457_v28 = vpop.f32.mrb[4].mxu0 }
 0x7e2   : > { %v2160_v29 = vpop.f32.mrb[5].mxu0  ;;  %1601 = vxpose.xlu0.b32.start [1/4] (short) (narrow) %v1457_v28, 8 }
 0x7e3   : > { %v1460_v30 = vpop.f32.mrb[6].mxu0 }
 0x7e4   : > { %v2161_v31 = vpop.f32.mrb[7].mxu0 }
 0x7e9   : > { %v1503_v32 = vpop.f32.mrb[16].mxu1 }
 0x7ea   : > { %v2166_v33 = vpop.f32.mrb[17].mxu1  ;;  %1602 = vxpose.xlu0.b32.cont [2/4] (short) (narrow) %v1503_v32, 8 }
 0x7eb   : > { %v1506_v34 = vpop.f32.mrb[18].mxu1 }
 0x7ec   : > { %v2167_v35 = vpop.f32.mrb[19].mxu1 }
 0x7f1   : > { %v1549_v36 = vpop.f32.mrb[8].mxu0 }
 0x7f2   : > { %v2172_v37 = vpop.f32.mrb[9].mxu0  ;;  %1603 = vxpose.xlu0.b32.cont [3/4] (short) (narrow) %v1549_v36, 8 }
 0x7f3   : > { %v1552_v38 = vpop.f32.mrb[10].mxu0 }
 0x7f4   : > { %v2173_v39 = vpop.f32.mrb[11].mxu0 }
 0x7f9   : > { %v1595_v40 = vpop.f32.mrb[20].mxu1 }
 0x7fa   : > { %v2178_v41 = vpop.f32.mrb[21].mxu1  ;;  %1604 = vxpose.xlu0.b32.end [4/4] (short) (narrow) %v1595_v40, 8 }
 0x7fb   : > { %v1598_v42 = vpop.f32.mrb[22].mxu1 }
 0x7fc   : > { %v2179_v43 = vpop.f32.mrb[23].mxu1 }
 0x86e   : > { %v1617_v44 = vpop.trf.xlu0 }
 0x86f   : > { %v1633_v1 = vpack.c.bf16 %v1617_v44, %v1617_v44 }
 0x871   : > { %2185 = vmatmul.mubr.msk.bf16.vlgmr.msra.gmra.mrb[12].mxu0 %vm884_vm2, %v1633_v1 }
 0x872   : > { %2204 = vmatprep.mubr.msk.bf16.mxu0 %vm2437_vm4, %v2436_v0  ;;  %2197 = vmatpush3.bf16.msra.mxu0 %v2314_v59 }
 0x873   : > { %2198 = vmatprep.subr.bf16.mxu0 %v2436_v0 }
 0x876   : > { %2199 = vmatpush3.bf16.msra.mxu0 %v2315_v60 }
 0x877   : > { %2200 = vmatprep.subr.bf16.mxu0 %v2436_v0 }
 0x87a   : > { %2201 = vmatpush3.bf16.msra.mxu0 %v2316_v9 }
 0x87b   : > { %2202 = vmatprep.subr.bf16.mxu0 %v2436_v0  ;;  %v2069_v0 = vld [vmem:[%s2984_s4] ss:$0 sm:$0xff] }
 0x87e   : > { %2203 = vmatpush3.bf16.msra.mxu0 %v2317_v10 }
 0x944   : > { %v1694_v46 = vpop.f32.mrb[12].mxu0 }
 0x945   : > { %v1695_v47 = vadd.f32 %v2059_v45, %v1694_v46  ;;  %v2186_v48 = vpop.f32.mrb[13].mxu0 }
 0x946   : > { %v1697_v49 = vpop.f32.mrb[14].mxu0 }
 0x947   : > { %v1700_v50 = vadd.f32 %v1695_v47, %v2701_v16  ;;  %v2187_v51 = vpop.f32.mrb[15].mxu0  ;;  %v2313_v16 = vld [vmem:[%s2976_s15 + $0x8] sm:$0xff]  }
 0x948   : > { %2191 = vmatpush3.bf16.msra.mxu1 %v2313_v16 }
 0x949   : > { %v1703_v52 = vsel %vm884_vm2, %v1700_v50, 0.0 }
 0x94a   : > { %1704 = vadd.xlane.f32.xlu1 %v1703_v52 }
 0x9d7   : > { %v1705_v53 = vpop.xlane.xlu1 %1704 }
 0x9d8   : > { %v1706_v54 = vmul.f32 0.03125, %v1705_v53 }
 0x9da   : > { %v1707_v55 = vsub.f32 %v1700_v50, %v1706_v54 }
 0x9dc   : > { %v1708_v56 = vmul.f32 %v1707_v55, %v1707_v55 }
 0x9de   : > { %v1709_v57 = vsel %vm884_vm2, %v1708_v56, 0.0 }
 0x9df   : > { %1710 = vadd.xlane.f32.xlu1 %v1709_v57 }
 0xa6c   : > { %v1711_v61 = vpop.xlane.xlu1 %1710 }
 0xa6d   : > { %v1712_v62 = vmul.f32 0.03125, %v1711_v61 }
 0xa6f   : > { %v1713_v63 = vadd.f32 1e-06, %v1712_v62 }
 0xa71   : > { %2336 = vrsqrt.f32 %v1713_v63 }
 0xa7b   : > { %v2337_v2 = vpop.eup %2336 }
 0xa7c   : > { %v1715_v4 = vmul.f32 %v2337_v2, %v1707_v55 }
 0xa7e   : > { %v1722_v6 = vmul.f32 %v2063_v3, %v1715_v4 }
 0xa80   : > { %v1729_v7 = vadd.f32 %v2064_v5, %v1722_v6 }
 0xa82   : > { %v1730_v8 = vpack.c.bf16 %v1729_v7, %v1729_v7 }
 0xa84   : > { %2193 = vmatmul.mubr.msk.bf16.vlgmr.msra.gmra.mrb[24].mxu1 %vm884_vm2, %v1730_v8 }
 0xb57   : > { %v1791_v12 = vpop.f32.mrb[24].mxu1 }
 0xb58   : > { %v1792_v13 = vadd.f32 %v2065_v11, %v1791_v12  ;;  %v2194_v14 = vpop.f32.mrb[25].mxu1 }
 0xb59   : > { %v1794_v15 = vpop.f32.mrb[26].mxu1 }
 0xb5a   : > { %v1797_v17 = vmax.f32 %v1792_v13, 0.0  ;;  %v2195_v18 = vpop.f32.mrb[27].mxu1 }
 0xb5c   : > { %v1798_v19 = vpack.c.bf16 %v1797_v17, %v1797_v17 }
 0xb5e   : > { %2205 = vmatmul.mubr.msk.bf16.vlgmr.msra.gmra.mrb[16].mxu0 %vm1838_vm7, %v1798_v19 }
 0xc31   : > { %v1876_v20 = vpop.f32.mrb[16].mxu0 }
 0xc32   : > { %v1877_v21 = vadd.f32 %v2069_v0, %v1876_v20  ;;  %v2206_v22 = vpop.f32.mrb[17].mxu0 }
 0xc33   : > { %v1879_v23 = vpop.f32.mrb[18].mxu0 }
 0xc34   : > { %v1882_v24 = vadd.f32 %v1877_v21, %v1700_v50  ;;  %v2207_v25 = vpop.f32.mrb[19].mxu0 }
 0xc36   : > { %1883 = vst.msk [vmem:[%s639_s14] sm:$0xff] %vm884_vm2, %v1882_v24 }
 0xc37   : > { %2351 = shalt.err (!%p2348_p9)
}
 0xc38   : > { %s2352_s14 = scalar_lea.hbm %s2850_s28, 128  ;;  %s2356_s26 = scalar_lea.hbm %s2986_s13, 512 }
 0xc39   : > { %p2353_p10 = scmp.ne.s32.totalorder %s2850_s28, %s2352_s14  ;;  %p2357_p13 = scmp.lt.u32.totalorder %s2850_s28, %s2986_s13 }
 0xc3a   : > { %p2358_p0 = scmp.lt.u32.totalorder %s2356_s26, %s2352_s14  ;;  %p2360_p2 = scmp.lt.u32.totalorder %s2352_s14, %s2850_s28 }
 0xc3b   : > { %p2354_p11 = pnand %p2353_p10, %p2585_p3 }
 0xc3c   : > { %p2359_p1 = por %p2358_p0, %p2357_p13 }
 0xc3d   : > { %p2355_p12 = pneg %p2354_p11 }
 0xc3e   : > { %p2361_p4 = por %p2360_p2, %p2359_p1 }
 0xc40   : > { %p2362_p5 = pnand %p2361_p4, %p2355_p12 }
 0xc42   : > { %2365 = shalt.err (!%p2362_p5)
}
 0xc43   : > { %2213 = dma.vmem_to_hbm [thread:$0]  (%p2585_p3), %s2852_s22, 128, %s2850_s28, %s1885_s29  }
 0xc44 PF: > { %s2988_s19 = sld [smem:[#allocation12_spill]]  ;;  %s2989_s24 = sld [smem:[#allocation6_spill]] }
 0xc4a   : > { %p2219_p6 = scmp.ge.s32.totalorder %s2988_s19, 2  ;;  %s1912_s5 = sand.u32 1, %s2989_s24  }
 0xc4b   : > { %s1913_s18 = scalar_lea.sflag [#allocation4], %s1912_s5 }
 0xc4c   : > { %p2216_p7 = pnand %p2219_p6, %p2594_p8 }
 0xc4e   : > { %2399 = dma.done.wait (!%p2216_p7), %s1913_s18, 128  }
 0xc4f   : > { %2401 = vsyncadd (!%p2216_p7), %s1913_s18, 4294967168  ;;  %s31_s20 = sadd.s32 1, %s2988_s19   ;;  %s2991_s27 = sld [smem:[#allocation7_spill]] }
 0xc50   : > { %p28_p9 = scmp.ge.s32.totalorder %s31_s20, 6   ;;  %s2992_s28 = sld [smem:[#allocation8_spill]] }
 0xc51   : > { %s2993_s29 = sld [smem:[#allocation17_spill]]  ;;  %s2994_s30 = sld [smem:[#allocation10_spill]] }
 0xc52   : > { %s2995_s0 = sld [smem:[#allocation11_spill]]  ;;  %s2996_s19 = sld [smem:[#allocation13_spill]] }
 0xc53   : > { %s2997_s1 = sld [smem:[#allocation15_spill]]  ;;  %30 = sbr.rel (!%p28_p9) target bundleno = 18 (0x12), region = 140 }
 0xc5a   :  { %1918 = vsyncpa [#allocation4], 1 }
 0xc5b   :  { %1920 = vsyncpa [#allocation4 + $0x1], 1 }

</bundles_post_ra>
